<compile_context>
chip_gen: v7x
topology: tpu7x:2x2x1
jax: 0.10.0
libtpu: 0.0.40
codegen_flags: <defaults>
</compile_context>

<pallas_src>
import functools

import numpy as np
import jax
import jax.numpy as jnp
from jax.experimental import pallas as pl
from jax.experimental.pallas import tpu as pltpu

MAX_SENT_LENGTH = 150  # unused at runtime: init_hidden() output is never consumed


def _round_up(x, m):
    return ((x + m - 1) // m) * m


# ----------------------------- Pallas kernel ------------------------------- #

def lstm_tagger_kernel(gx_ref, mask_ref, whh_ref, wout_f_ref, wout_b_ref, bout_ref,
                       scores_ref, pred_ref, hbuf_f, hbuf_b, *, T, B, Hd, K):
    """Fused BiLSTM (packed semantics via mask) + hidden2tag + log_softmax + argmax.

    gx_ref:   (T*B, 8*Hd) f32  pre-projected gate inputs; pair-step row block s holds
                               forward time s in the fwd gate lanes and backward time
                               T-1-s in the bwd gate lanes.  Gate lane layout:
                               [i_f,i_b | f_f,f_b | o_f,o_b | g_f,g_b], each Hd wide.
    mask_ref: (T*B, 2*Hd) f32  1.0 where the (direction, time) is inside the sequence.
    whh_ref:  (2*Hd, 8*Hd) f32 block-diagonal recurrent weight ([h_f|h_b] -> gates).
    wout_*:   (Hd, K)      f32 hidden2tag split per direction.
    bout:     (1, K)       f32
    scores_ref: (B, score_pad) f32  out: row-major flatten of tag_scores (B, T, K),
                                    zero-padded to a 128-lane boundary.
    pred_ref:   (B, pred_pad)  i32  out: argmax over dim=1 of tag_scores.view(B, K, T).
    hbuf_f/b:   (T*B, Hd)  f32 VMEM scratch: masked per-time outputs per direction.
    """
    S = 2 * Hd                                 # combined [fwd|bwd] state width
    whh = whh_ref[...]                         # (2*Hd, 8*Hd)

    h = jnp.zeros((B, S), jnp.float32)         # [h_f | h_b]; zero init (self.hidden unused)
    c = jnp.zeros((B, S), jnp.float32)

    # Fused recurrence: pair-step s = forward LSTM at time s + backward LSTM at
    # time T-1-s.  T is small and static here, so the loop is fully unrolled with
    # static, sublane-aligned slab indices (scratch-backed accumulation keeps vreg
    # pressure flat; switch to lax.fori_loop for T ~ MAX_SENT_LENGTH).
    for s in range(T):
        r0 = s * B
        gx = gx_ref[r0:r0 + B, :]                              # (B, 8*Hd) aligned slab
        m = mask_ref[r0:r0 + B, :] > 0.0                       # (B, 2*Hd) bool
        gates = gx + jnp.dot(h, whh, preferred_element_type=jnp.float32)
        sg = jax.nn.sigmoid(gates[:, 0:3 * S])                 # i | f | o (both dirs)
        gg = jnp.tanh(gates[:, 3 * S:4 * S])                   # g       (both dirs)
        i_g = sg[:, 0:S]
        f_g = sg[:, S:2 * S]
        o_g = sg[:, 2 * S:3 * S]
        c_new = f_g * c + i_g * gg
        h_new = o_g * jnp.tanh(c_new)
        h = jnp.where(m, h_new, h)                             # freeze state past length
        c = jnp.where(m, c_new, c)
        out = jnp.where(m, h_new, 0.0)                         # packed output: zeros past length
        # Scatter to time-consistent rows (off the serial chain): fwd half -> time s,
        # bwd half -> time T-1-s.  Full-lane-width, sublane-aligned stores.
        hbuf_f[r0:r0 + B, :] = out[:, 0:Hd]
        rb = (T - 1 - s) * B
        hbuf_b[rb:rb + B, :] = out[:, Hd:2 * Hd]

    # hidden2tag hoisted out of the recurrence (dropout p=0 -> identity): one
    # (T*B, Hd)@(Hd, K) matmul per direction.  (Summing the two halves reassociates
    # vs a single (H, K) matmul -- tiny, documented deviation.)
    tag = (jnp.dot(hbuf_f[...], wout_f_ref[...], preferred_element_type=jnp.float32)
           + jnp.dot(hbuf_b[...], wout_b_ref[...], preferred_element_type=jnp.float32)
           + bout_ref[...])                                    # (T*B, K)

    # log_softmax over dim=1 of (B, T, K) == the TIME axis, as an elementwise
    # max/exp/sum tree over sublane-aligned per-step slabs (no 3-D reductions).
    slabs = [tag[t * B:(t + 1) * B, :] for t in range(T)]
    mx = functools.reduce(jnp.maximum, slabs)                                  # (B, K)
    denom = functools.reduce(lambda a, b: a + b, [jnp.exp(sl - mx) for sl in slabs])
    lse = mx + jnp.log(denom)                                                  # (B, K)
    norm = [sl - lse for sl in slabs]                                          # T x (B, K)

    # Batch-major, lane-dense output slab: bm[b, t*K + k] == tag_scores[b, t, k],
    # zero-padded to the 128-lane boundary -> single unmasked store.
    pad_cols = scores_ref.shape[1] - T * K
    pieces = norm + ([jnp.zeros((B, pad_cols), jnp.float32)] if pad_cols else [])
    bm = jnp.concatenate(pieces, axis=1)
    scores_ref[...] = bm

    # predicted = argmax over dim=1 of tag_scores.view(B, K, T):
    #   view[b, k, t'] = bm[b, k*T + t']  (row-major reinterpretation, NOT a transpose)
    # First-max tie-break (strict >) matches torch.argmax.
    best = bm[:, 0:T]
    besti = jnp.zeros((B, T), jnp.int32)
    for k in range(1, K):
        cand = bm[:, k * T:(k + 1) * T]
        upd = cand > best
        besti = jnp.where(upd, jnp.int32(k), besti)
        best = jnp.where(upd, cand, best)
    ppad = pred_ref.shape[1] - T
    ppieces = [besti] + ([jnp.zeros((B, ppad), jnp.int32)] if ppad else [])
    pred_ref[...] = jnp.concatenate(ppieces, axis=1)


# ------------------------------- wrapper ----------------------------------- #

def lstm_tagger_forward(sentence, params, pad_idx=0):
    """Exact forward of LSTMTagger (with dropout p=0).  sentence: (B, T) int32."""
    B, T = sentence.shape
    table = params["table_proj"]                     # (V, 8*Hd), bias folded in
    whh_bd = params["whh_bd"]                        # (2*Hd, 8*Hd)
    Hd, K = params["wout_f"].shape
    B_pad = _round_up(B, 8)                          # f32 sublane tile
    score_pad = _round_up(T * K, 128)                # lane-dense output widths
    pred_pad = _round_up(T, 128)

    # lengths: the reference counts nonzero tokens (torch.nonzero); identical to
    # `!= pad_idx` here because pad_idx == 0 (made explicit per review).
    lengths = jnp.sum((sentence != pad_idx).astype(jnp.int32), axis=1)

    # Pad batch to the sublane tile; ghost rows have length 0 and stay masked.
    sent_p = jnp.full((B_pad, T), pad_idx, jnp.int32).at[:B, :].set(sentence)
    len_p = jnp.zeros((B_pad,), jnp.int32).at[:B].set(lengths)
    valid = jnp.arange(T, dtype=jnp.int32)[None, :] < len_p[:, None]        # (B_pad, T)

    # Time-major fused-step inputs (all XLA, off the kernel critical path):
    # pair-step s carries forward time s (fwd gate lanes) and backward time T-1-s
    # (bwd gate lanes).  The input projection is already folded into `table`.
    tok_f = sent_p.T                                                         # (T, B_pad)
    tok_b = sent_p[:, ::-1].T
    gf = jnp.take(table, tok_f, axis=0)                                      # (T, B_pad, 8*Hd)
    gb = jnp.take(table, tok_b, axis=0)
    lane_is_fwd = (np.arange(8 * Hd) // Hd) % 2 == 0     # [i_f,i_b,f_f,f_b,o_f,o_b,g_f,g_b]
    gx_pair = jnp.where(lane_is_fwd, gf, gb).reshape(T * B_pad, 8 * Hd)

    mf = valid.T.astype(jnp.float32)[:, :, None]                             # (T, B_pad, 1)
    mb = valid[:, ::-1].T.astype(jnp.float32)[:, :, None]
    mask_pair = jnp.concatenate(
        [jnp.broadcast_to(mf, (T, B_pad, Hd)),
         jnp.broadcast_to(mb, (T, B_pad, Hd))], axis=-1).reshape(T * B_pad, 2 * Hd)

    vmem = pl.BlockSpec(memory_space=pltpu.MemorySpace.VMEM)
    kernel = functools.partial(lstm_tagger_kernel, T=T, B=B_pad, Hd=Hd, K=K)

    scores_padded, pred_padded = pl.pallas_call(
        kernel,
        out_shape=(jax.ShapeDtypeStruct((B_pad, score_pad), jnp.float32),
                   jax.ShapeDtypeStruct((B_pad, pred_pad), jnp.int32)),
        in_specs=[vmem] * 6,
        out_specs=(vmem, vmem),
        scratch_shapes=[pltpu.VMEM((T * B_pad, Hd), jnp.float32),
                        pltpu.VMEM((T * B_pad, Hd), jnp.float32)],
    )(gx_pair, mask_pair, whh_bd, params["wout_f"], params["wout_b"], params["bout"])

    # (B, T*K) row-major == (B, T, K): free reshape, no data movement.
    tag_scores = scores_padded[:B, :T * K].reshape(B, T, K)
    predicted = pred_padded[:B, :T]
    return tag_scores, predicted


# ---------------------------- parameter init -------------------------------- #

def init_params(key, vocab_size, embedding_dim, hidden_dim, tagset_size, pad_idx):
    Hd = hidden_dim // 2
    ks = jax.random.split(key, 12)
    k_lstm = 1.0 / np.sqrt(Hd)
    k_lin = 1.0 / np.sqrt(hidden_dim)

    def u(k, shape, s):
        return jax.random.uniform(k, shape, jnp.float32, -s, s)

    emb = jax.random.normal(ks[0], (vocab_size, embedding_dim), jnp.float32)
    emb = emb.at[pad_idx].set(0.0)          # nn.Embedding padding_idx row is zero

    # Per-direction weights in PyTorch layout (stored transposed for x @ W),
    # gate column order (i, f, g, o); bias = bias_ih + bias_hh.
    wih_f = u(ks[1], (embedding_dim, 4 * Hd), k_lstm)
    wih_b = u(ks[2], (embedding_dim, 4 * Hd), k_lstm)
    b_f = u(ks[3], (1, 4 * Hd), k_lstm) + u(ks[4], (1, 4 * Hd), k_lstm)
    b_b = u(ks[5], (1, 4 * Hd), k_lstm) + u(ks[6], (1, 4 * Hd), k_lstm)
    whh_f = u(ks[7], (Hd, 4 * Hd), k_lstm)
    whh_b = u(ks[8], (Hd, 4 * Hd), k_lstm)
    wout = u(ks[9], (hidden_dim, tagset_size), k_lin)     # hidden2tag.weight.T, rows [fwd|bwd]
    bout = u(ks[10], (1, tagset_size), k_lin)

    def pair_cols(mf, mb):
        # (.., 4*Hd) per direction, PyTorch order [i|f|g|o]  ->
        # (.., 8*Hd) pair layout [i_f,i_b | f_f,f_b | o_f,o_b | g_f,g_b]
        pieces = []
        for q in (0, 1, 3, 2):                            # i, f, o, g
            pieces.append(mf[..., q * Hd:(q + 1) * Hd])
            pieces.append(mb[..., q * Hd:(q + 1) * Hd])
        return jnp.concatenate(pieces, axis=-1)

    wih_pair = pair_cols(wih_f, wih_b)                    # (E, 8*Hd)
    b_pair = pair_cols(b_f, b_b)                          # (1, 8*Hd)
    # Pre-multiplied embedding table with the LSTM biases folded in: gathering rows
    # of (emb @ W) is bit-identical to (gathered emb) @ W.  One-time, HIGHEST precision.
    table_proj = jnp.dot(emb, wih_pair,
                         precision=jax.lax.Precision.HIGHEST) + b_pair    # (V, 8*Hd)

    # Block-diagonal recurrent weight for the fused pair-step: h_f rows feed only
    # fwd gate columns, h_b rows only bwd gate columns.
    whh_bd = jnp.concatenate(
        [pair_cols(whh_f, jnp.zeros_like(whh_f)),
         pair_cols(jnp.zeros_like(whh_b), whh_b)], axis=0)                # (2*Hd, 8*Hd)

    return dict(table_proj=table_proj, whh_bd=whh_bd,
                wout_f=wout[:Hd, :], wout_b=wout[Hd:, :], bout=bout)


if __name__ == "__main__":
    # Small shapes consistent with the module's forward.
    B, T = 4, 12
    embedding_dim, hidden_dim = 32, 32            # Hd = 16 -> 8*Hd = 128 (one full vreg)
    vocab_size, tagset_size, pad_idx = 50, 6, 0
    dropout_rate = 0.0  # TODO(synk): F.dropout training=True default (stochastic); identity for p=0

    key = jax.random.PRNGKey(0)
    pkey, skey = jax.random.split(key)
    params = init_params(pkey, vocab_size, embedding_dim, hidden_dim, tagset_size, pad_idx)

    # Sentences padded with pad_idx=0 at the end; one full-length sequence so that
    # pad_packed_sequence would pad back to T (keeps output shapes static).
    lengths = np.array([12, 9, 7, 5], dtype=np.int32)
    assert int(lengths.max()) == T
    tokens = jax.random.randint(skey, (B, T), 1, vocab_size, dtype=jnp.int32)
    valid = jnp.asarray(np.arange(T)[None, :] < lengths[:, None])
    sentence = jnp.where(valid, tokens, pad_idx).astype(jnp.int32)

    tag_scores, predicted = lstm_tagger_forward(sentence, params, pad_idx=pad_idx)
    jax.block_until_ready((tag_scores, predicted))

    assert tag_scores.shape == (B, T, tagset_size)
    assert tag_scores.dtype == jnp.float32
    assert predicted.shape == (B, T)
    assert predicted.dtype == jnp.int32
    assert bool(jnp.all(jnp.isfinite(tag_scores)))

    # Self-consistency: log_softmax over the time axis sums to 1 per (b, k) ...
    ts = np.asarray(tag_scores, dtype=np.float64)
    np.testing.assert_allclose(np.log(np.exp(ts).sum(axis=1)), 0.0, atol=1e-3)
    # ... and predicted matches argmax of the (B, K, T) row-major view of the scores.
    flat = np.asarray(tag_scores).reshape(B, T * tagset_size)
    view = flat.reshape(B, tagset_size, T)
    np.testing.assert_array_equal(np.asarray(predicted), view.argmax(axis=1))

    print("KERNEL_OK")
</pallas_src>

<mosaic_0001>
module attributes {stable_mosaic.version = 11 : i64} {
  func.func @lstm_tagger_kernel(%arg0: memref<96x128xf32, #tpu.memory_space<vmem>>, %arg1: memref<96x32xf32, #tpu.memory_space<vmem>>, %arg2: memref<32x128xf32, #tpu.memory_space<vmem>>, %arg3: memref<16x6xf32, #tpu.memory_space<vmem>>, %arg4: memref<16x6xf32, #tpu.memory_space<vmem>>, %arg5: memref<1x6xf32, #tpu.memory_space<vmem>>, %arg6: memref<8x128xf32, #tpu.memory_space<vmem>>, %arg7: memref<8x128xi32, #tpu.memory_space<vmem>>, %arg8: memref<96x16xf32, #tpu.memory_space<vmem>>, %arg9: memref<96x16xf32, #tpu.memory_space<vmem>>) attributes {dimension_semantics = [], scalar_prefetch = 0 : i64, scratch_operands = 2 : i64, tpu.core_type = #tpu.core_type<tc>} {
    %c0 = arith.constant 0 : index
    %c0_0 = arith.constant 0 : index
    %0 = vector.load %arg2[%c0, %c0_0] : memref<32x128xf32, #tpu.memory_space<vmem>>, vector<32x128xf32>
    %cst = arith.constant 0.000000e+00 : f32
    %1 = vector.broadcast %cst : f32 to vector<8x32xf32>
    %cst_1 = arith.constant 0.000000e+00 : f32
    %2 = vector.broadcast %cst_1 : f32 to vector<8x32xf32>
    %c0_2 = arith.constant 0 : index
    %c0_3 = arith.constant 0 : index
    %3 = vector.load %arg0[%c0_2, %c0_3] : memref<96x128xf32, #tpu.memory_space<vmem>>, vector<8x128xf32>
    %c0_4 = arith.constant 0 : index
    %c0_5 = arith.constant 0 : index
    %4 = vector.load %arg1[%c0_4, %c0_5] : memref<96x32xf32, #tpu.memory_space<vmem>>, vector<8x32xf32>
    %cst_6 = arith.constant 0.000000e+00 : f32
    %5 = vector.broadcast %cst_6 : f32 to vector<8x32xf32>
    %6 = arith.cmpf ogt, %4, %5 : vector<8x32xf32>
    %cst_7 = arith.constant dense<0.000000e+00> : vector<8x128xf32>
    %7 = tpu.matmul %1, %0, %cst_7 {dimension_numbers = #tpu.dot_dimension_numbers<[1], [0], [0], [1], [0, 0, 1, 1], [], []>} : vector<8x32xf32>, vector<32x128xf32>, vector<8x128xf32> -> vector<8x128xf32>
    %8 = arith.addf %3, %7 : vector<8x128xf32>
    %9 = vector.extract_strided_slice %8 {offsets = [0, 0], sizes = [8, 96], strides = [1, 1]} : vector<8x128xf32> to vector<8x96xf32>
    %10 = arith.negf %9 : vector<8x96xf32>
    %11 = math.exp %10 : vector<8x96xf32>
    %cst_8 = arith.constant 1.000000e+00 : f32
    %12 = vector.broadcast %cst_8 : f32 to vector<8x96xf32>
    %13 = arith.addf %12, %11 : vector<8x96xf32>
    %14 = arith.divf %12, %13 : vector<8x96xf32>
    %15 = vector.extract_strided_slice %8 {offsets = [0, 96], sizes = [8, 32], strides = [1, 1]} : vector<8x128xf32> to vector<8x32xf32>
    %16 = math.tanh %15 : vector<8x32xf32>
    %17 = vector.extract_strided_slice %14 {offsets = [0, 0], sizes = [8, 32], strides = [1, 1]} : vector<8x96xf32> to vector<8x32xf32>
    %18 = vector.extract_strided_slice %14 {offsets = [0, 32], sizes = [8, 32], strides = [1, 1]} : vector<8x96xf32> to vector<8x32xf32>
    %19 = vector.extract_strided_slice %14 {offsets = [0, 64], sizes = [8, 32], strides = [1, 1]} : vector<8x96xf32> to vector<8x32xf32>
    %20 = arith.mulf %18, %2 : vector<8x32xf32>
    %21 = arith.mulf %17, %16 : vector<8x32xf32>
    %22 = arith.addf %20, %21 : vector<8x32xf32>
    %23 = math.tanh %22 : vector<8x32xf32>
    %24 = arith.mulf %19, %23 : vector<8x32xf32>
    %25 = arith.select %6, %24, %1 : vector<8x32xi1>, vector<8x32xf32>
    %26 = arith.select %6, %22, %2 : vector<8x32xi1>, vector<8x32xf32>
    %cst_9 = arith.constant 0.000000e+00 : f32
    %27 = vector.broadcast %cst_9 : f32 to vector<8x32xf32>
    %28 = arith.select %6, %24, %27 : vector<8x32xi1>, vector<8x32xf32>
    %29 = vector.extract_strided_slice %28 {offsets = [0, 0], sizes = [8, 16], strides = [1, 1]} : vector<8x32xf32> to vector<8x16xf32>
    %c0_10 = arith.constant 0 : index
    %c0_11 = arith.constant 0 : index
    %30 = vector.load %arg8[%c0_10, %c0_11] : memref<96x16xf32, #tpu.memory_space<vmem>>, vector<8x16xf32>
    tpu.vector_store %arg8[%c0_10, %c0_11], %29 {strides = array<i32>} : memref<96x16xf32, #tpu.memory_space<vmem>>, vector<8x16xf32>,
    %31 = vector.extract_strided_slice %28 {offsets = [0, 16], sizes = [8, 16], strides = [1, 1]} : vector<8x32xf32> to vector<8x16xf32>
    %c88 = arith.constant 88 : index
    %c0_12 = arith.constant 0 : index
    %32 = vector.load %arg9[%c88, %c0_12] : memref<96x16xf32, #tpu.memory_space<vmem>>, vector<8x16xf32>
    tpu.vector_store %arg9[%c88, %c0_12], %31 {strides = array<i32>} : memref<96x16xf32, #tpu.memory_space<vmem>>, vector<8x16xf32>,
    %c8 = arith.constant 8 : index
    %c0_13 = arith.constant 0 : index
    %33 = vector.load %arg0[%c8, %c0_13] : memref<96x128xf32, #tpu.memory_space<vmem>>, vector<8x128xf32>
    %c8_14 = arith.constant 8 : index
    %c0_15 = arith.constant 0 : index
    %34 = vector.load %arg1[%c8_14, %c0_15] : memref<96x32xf32, #tpu.memory_space<vmem>>, vector<8x32xf32>
    %cst_16 = arith.constant 0.000000e+00 : f32
    %35 = vector.broadcast %cst_16 : f32 to vector<8x32xf32>
    %36 = arith.cmpf ogt, %34, %35 : vector<8x32xf32>
    %cst_17 = arith.constant dense<0.000000e+00> : vector<8x128xf32>
    %37 = tpu.matmul %25, %0, %cst_17 {dimension_numbers = #tpu.dot_dimension_numbers<[1], [0], [0], [1], [0, 0, 1, 1], [], []>} : vector<8x32xf32>, vector<32x128xf32>, vector<8x128xf32> -> vector<8x128xf32>
    %38 = arith.addf %33, %37 : vector<8x128xf32>
    %39 = vector.extract_strided_slice %38 {offsets = [0, 0], sizes = [8, 96], strides = [1, 1]} : vector<8x128xf32> to vector<8x96xf32>
    %40 = arith.negf %39 : vector<8x96xf32>
    %41 = math.exp %40 : vector<8x96xf32>
    %cst_18 = arith.constant 1.000000e+00 : f32
    %42 = vector.broadcast %cst_18 : f32 to vector<8x96xf32>
    %43 = arith.addf %42, %41 : vector<8x96xf32>
    %44 = arith.divf %42, %43 : vector<8x96xf32>
    %45 = vector.extract_strided_slice %38 {offsets = [0, 96], sizes = [8, 32], strides = [1, 1]} : vector<8x128xf32> to vector<8x32xf32>
    %46 = math.tanh %45 : vector<8x32xf32>
    %47 = vector.extract_strided_slice %44 {offsets = [0, 0], sizes = [8, 32], strides = [1, 1]} : vector<8x96xf32> to vector<8x32xf32>
    %48 = vector.extract_strided_slice %44 {offsets = [0, 32], sizes = [8, 32], strides = [1, 1]} : vector<8x96xf32> to vector<8x32xf32>
    %49 = vector.extract_strided_slice %44 {offsets = [0, 64], sizes = [8, 32], strides = [1, 1]} : vector<8x96xf32> to vector<8x32xf32>
    %50 = arith.mulf %48, %26 : vector<8x32xf32>
    %51 = arith.mulf %47, %46 : vector<8x32xf32>
    %52 = arith.addf %50, %51 : vector<8x32xf32>
    %53 = math.tanh %52 : vector<8x32xf32>
    %54 = arith.mulf %49, %53 : vector<8x32xf32>
    %55 = arith.select %36, %54, %25 : vector<8x32xi1>, vector<8x32xf32>
    %56 = arith.select %36, %52, %26 : vector<8x32xi1>, vector<8x32xf32>
    %cst_19 = arith.constant 0.000000e+00 : f32
    %57 = vector.broadcast %cst_19 : f32 to vector<8x32xf32>
    %58 = arith.select %36, %54, %57 : vector<8x32xi1>, vector<8x32xf32>
    %59 = vector.extract_strided_slice %58 {offsets = [0, 0], sizes = [8, 16], strides = [1, 1]} : vector<8x32xf32> to vector<8x16xf32>
    %c8_20 = arith.constant 8 : index
    %c0_21 = arith.constant 0 : index
    %60 = vector.load %arg8[%c8_20, %c0_21] : memref<96x16xf32, #tpu.memory_space<vmem>>, vector<8x16xf32>
    tpu.vector_store %arg8[%c8_20, %c0_21], %59 {strides = array<i32>} : memref<96x16xf32, #tpu.memory_space<vmem>>, vector<8x16xf32>,
    %61 = vector.extract_strided_slice %58 {offsets = [0, 16], sizes = [8, 16], strides = [1, 1]} : vector<8x32xf32> to vector<8x16xf32>
    %c80 = arith.constant 80 : index
    %c0_22 = arith.constant 0 : index
    %62 = vector.load %arg9[%c80, %c0_22] : memref<96x16xf32, #tpu.memory_space<vmem>>, vector<8x16xf32>
    tpu.vector_store %arg9[%c80, %c0_22], %61 {strides = array<i32>} : memref<96x16xf32, #tpu.memory_space<vmem>>, vector<8x16xf32>,
    %c16 = arith.constant 16 : index
    %c0_23 = arith.constant 0 : index
    %63 = vector.load %arg0[%c16, %c0_23] : memref<96x128xf32, #tpu.memory_space<vmem>>, vector<8x128xf32>
    %c16_24 = arith.constant 16 : index
    %c0_25 = arith.constant 0 : index
    %64 = vector.load %arg1[%c16_24, %c0_25] : memref<96x32xf32, #tpu.memory_space<vmem>>, vector<8x32xf32>
    %cst_26 = arith.constant 0.000000e+00 : f32
    %65 = vector.broadcast %cst_26 : f32 to vector<8x32xf32>
    %66 = arith.cmpf ogt, %64, %65 : vector<8x32xf32>
    %cst_27 = arith.constant dense<0.000000e+00> : vector<8x128xf32>
    %67 = tpu.matmul %55, %0, %cst_27 {dimension_numbers = #tpu.dot_dimension_numbers<[1], [0], [0], [1], [0, 0, 1, 1], [], []>} : vector<8x32xf32>, vector<32x128xf32>, vector<8x128xf32> -> vector<8x128xf32>
    %68 = arith.addf %63, %67 : vector<8x128xf32>
    %69 = vector.extract_strided_slice %68 {offsets = [0, 0], sizes = [8, 96], strides = [1, 1]} : vector<8x128xf32> to vector<8x96xf32>
    %70 = arith.negf %69 : vector<8x96xf32>
    %71 = math.exp %70 : vector<8x96xf32>
    %cst_28 = arith.constant 1.000000e+00 : f32
    %72 = vector.broadcast %cst_28 : f32 to vector<8x96xf32>
    %73 = arith.addf %72, %71 : vector<8x96xf32>
    %74 = arith.divf %72, %73 : vector<8x96xf32>
    %75 = vector.extract_strided_slice %68 {offsets = [0, 96], sizes = [8, 32], strides = [1, 1]} : vector<8x128xf32> to vector<8x32xf32>
    %76 = math.tanh %75 : vector<8x32xf32>
    %77 = vector.extract_strided_slice %74 {offsets = [0, 0], sizes = [8, 32], strides = [1, 1]} : vector<8x96xf32> to vector<8x32xf32>
    %78 = vector.extract_strided_slice %74 {offsets = [0, 32], sizes = [8, 32], strides = [1, 1]} : vector<8x96xf32> to vector<8x32xf32>
    %79 = vector.extract_strided_slice %74 {offsets = [0, 64], sizes = [8, 32], strides = [1, 1]} : vector<8x96xf32> to vector<8x32xf32>
    %80 = arith.mulf %78, %56 : vector<8x32xf32>
    %81 = arith.mulf %77, %76 : vector<8x32xf32>
    %82 = arith.addf %80, %81 : vector<8x32xf32>
    %83 = math.tanh %82 : vector<8x32xf32>
    %84 = arith.mulf %79, %83 : vector<8x32xf32>
    %85 = arith.select %66, %84, %55 : vector<8x32xi1>, vector<8x32xf32>
    %86 = arith.select %66, %82, %56 : vector<8x32xi1>, vector<8x32xf32>
    %cst_29 = arith.constant 0.000000e+00 : f32
    %87 = vector.broadcast %cst_29 : f32 to vector<8x32xf32>
    %88 = arith.select %66, %84, %87 : vector<8x32xi1>, vector<8x32xf32>
    %89 = vector.extract_strided_slice %88 {offsets = [0, 0], sizes = [8, 16], strides = [1, 1]} : vector<8x32xf32> to vector<8x16xf32>
    %c16_30 = arith.constant 16 : index
    %c0_31 = arith.constant 0 : index
    %90 = vector.load %arg8[%c16_30, %c0_31] : memref<96x16xf32, #tpu.memory_space<vmem>>, vector<8x16xf32>
    tpu.vector_store %arg8[%c16_30, %c0_31], %89 {strides = array<i32>} : memref<96x16xf32, #tpu.memory_space<vmem>>, vector<8x16xf32>,
    %91 = vector.extract_strided_slice %88 {offsets = [0, 16], sizes = [8, 16], strides = [1, 1]} : vector<8x32xf32> to vector<8x16xf32>
    %c72 = arith.constant 72 : index
    %c0_32 = arith.constant 0 : index
    %92 = vector.load %arg9[%c72, %c0_32] : memref<96x16xf32, #tpu.memory_space<vmem>>, vector<8x16xf32>
    tpu.vector_store %arg9[%c72, %c0_32], %91 {strides = array<i32>} : memref<96x16xf32, #tpu.memory_space<vmem>>, vector<8x16xf32>,
    %c24 = arith.constant 24 : index
    %c0_33 = arith.constant 0 : index
    %93 = vector.load %arg0[%c24, %c0_33] : memref<96x128xf32, #tpu.memory_space<vmem>>, vector<8x128xf32>
    %c24_34 = arith.constant 24 : index
    %c0_35 = arith.constant 0 : index
    %94 = vector.load %arg1[%c24_34, %c0_35] : memref<96x32xf32, #tpu.memory_space<vmem>>, vector<8x32xf32>
    %cst_36 = arith.constant 0.000000e+00 : f32
    %95 = vector.broadcast %cst_36 : f32 to vector<8x32xf32>
    %96 = arith.cmpf ogt, %94, %95 : vector<8x32xf32>
    %cst_37 = arith.constant dense<0.000000e+00> : vector<8x128xf32>
    %97 = tpu.matmul %85, %0, %cst_37 {dimension_numbers = #tpu.dot_dimension_numbers<[1], [0], [0], [1], [0, 0, 1, 1], [], []>} : vector<8x32xf32>, vector<32x128xf32>, vector<8x128xf32> -> vector<8x128xf32>
    %98 = arith.addf %93, %97 : vector<8x128xf32>
    %99 = vector.extract_strided_slice %98 {offsets = [0, 0], sizes = [8, 96], strides = [1, 1]} : vector<8x128xf32> to vector<8x96xf32>
    %100 = arith.negf %99 : vector<8x96xf32>
    %101 = math.exp %100 : vector<8x96xf32>
    %cst_38 = arith.constant 1.000000e+00 : f32
    %102 = vector.broadcast %cst_38 : f32 to vector<8x96xf32>
    %103 = arith.addf %102, %101 : vector<8x96xf32>
    %104 = arith.divf %102, %103 : vector<8x96xf32>
    %105 = vector.extract_strided_slice %98 {offsets = [0, 96], sizes = [8, 32], strides = [1, 1]} : vector<8x128xf32> to vector<8x32xf32>
    %106 = math.tanh %105 : vector<8x32xf32>
    %107 = vector.extract_strided_slice %104 {offsets = [0, 0], sizes = [8, 32], strides = [1, 1]} : vector<8x96xf32> to vector<8x32xf32>
    %108 = vector.extract_strided_slice %104 {offsets = [0, 32], sizes = [8, 32], strides = [1, 1]} : vector<8x96xf32> to vector<8x32xf32>
    %109 = vector.extract_strided_slice %104 {offsets = [0, 64], sizes = [8, 32], strides = [1, 1]} : vector<8x96xf32> to vector<8x32xf32>
    %110 = arith.mulf %108, %86 : vector<8x32xf32>
    %111 = arith.mulf %107, %106 : vector<8x32xf32>
    %112 = arith.addf %110, %111 : vector<8x32xf32>
    %113 = math.tanh %112 : vector<8x32xf32>
    %114 = arith.mulf %109, %113 : vector<8x32xf32>
    %115 = arith.select %96, %114, %85 : vector<8x32xi1>, vector<8x32xf32>
    %116 = arith.select %96, %112, %86 : vector<8x32xi1>, vector<8x32xf32>
    %cst_39 = arith.constant 0.000000e+00 : f32
    %117 = vector.broadcast %cst_39 : f32 to vector<8x32xf32>
    %118 = arith.select %96, %114, %117 : vector<8x32xi1>, vector<8x32xf32>
    %119 = vector.extract_strided_slice %118 {offsets = [0, 0], sizes = [8, 16], strides = [1, 1]} : vector<8x32xf32> to vector<8x16xf32>
    %c24_40 = arith.constant 24 : index
    %c0_41 = arith.constant 0 : index
    %120 = vector.load %arg8[%c24_40, %c0_41] : memref<96x16xf32, #tpu.memory_space<vmem>>, vector<8x16xf32>
    tpu.vector_store %arg8[%c24_40, %c0_41], %119 {strides = array<i32>} : memref<96x16xf32, #tpu.memory_space<vmem>>, vector<8x16xf32>,
    %121 = vector.extract_strided_slice %118 {offsets = [0, 16], sizes = [8, 16], strides = [1, 1]} : vector<8x32xf32> to vector<8x16xf32>
    %c64 = arith.constant 64 : index
    %c0_42 = arith.constant 0 : index
    %122 = vector.load %arg9[%c64, %c0_42] : memref<96x16xf32, #tpu.memory_space<vmem>>, vector<8x16xf32>
    tpu.vector_store %arg9[%c64, %c0_42], %121 {strides = array<i32>} : memref<96x16xf32, #tpu.memory_space<vmem>>, vector<8x16xf32>,
    %c32 = arith.constant 32 : index
    %c0_43 = arith.constant 0 : index
    %123 = vector.load %arg0[%c32, %c0_43] : memref<96x128xf32, #tpu.memory_space<vmem>>, vector<8x128xf32>
    %c32_44 = arith.constant 32 : index
    %c0_45 = arith.constant 0 : index
    %124 = vector.load %arg1[%c32_44, %c0_45] : memref<96x32xf32, #tpu.memory_space<vmem>>, vector<8x32xf32>
    %cst_46 = arith.constant 0.000000e+00 : f32
    %125 = vector.broadcast %cst_46 : f32 to vector<8x32xf32>
    %126 = arith.cmpf ogt, %124, %125 : vector<8x32xf32>
    %cst_47 = arith.constant dense<0.000000e+00> : vector<8x128xf32>
    %127 = tpu.matmul %115, %0, %cst_47 {dimension_numbers = #tpu.dot_dimension_numbers<[1], [0], [0], [1], [0, 0, 1, 1], [], []>} : vector<8x32xf32>, vector<32x128xf32>, vector<8x128xf32> -> vector<8x128xf32>
    %128 = arith.addf %123, %127 : vector<8x128xf32>
    %129 = vector.extract_strided_slice %128 {offsets = [0, 0], sizes = [8, 96], strides = [1, 1]} : vector<8x128xf32> to vector<8x96xf32>
    %130 = arith.negf %129 : vector<8x96xf32>
    %131 = math.exp %130 : vector<8x96xf32>
    %cst_48 = arith.constant 1.000000e+00 : f32
    %132 = vector.broadcast %cst_48 : f32 to vector<8x96xf32>
    %133 = arith.addf %132, %131 : vector<8x96xf32>
    %134 = arith.divf %132, %133 : vector<8x96xf32>
    %135 = vector.extract_strided_slice %128 {offsets = [0, 96], sizes = [8, 32], strides = [1, 1]} : vector<8x128xf32> to vector<8x32xf32>
    %136 = math.tanh %135 : vector<8x32xf32>
    %137 = vector.extract_strided_slice %134 {offsets = [0, 0], sizes = [8, 32], strides = [1, 1]} : vector<8x96xf32> to vector<8x32xf32>
    %138 = vector.extract_strided_slice %134 {offsets = [0, 32], sizes = [8, 32], strides = [1, 1]} : vector<8x96xf32> to vector<8x32xf32>
    %139 = vector.extract_strided_slice %134 {offsets = [0, 64], sizes = [8, 32], strides = [1, 1]} : vector<8x96xf32> to vector<8x32xf32>
    %140 = arith.mulf %138, %116 : vector<8x32xf32>
    %141 = arith.mulf %137, %136 : vector<8x32xf32>
    %142 = arith.addf %140, %141 : vector<8x32xf32>
    %143 = math.tanh %142 : vector<8x32xf32>
    %144 = arith.mulf %139, %143 : vector<8x32xf32>
    %145 = arith.select %126, %144, %115 : vector<8x32xi1>, vector<8x32xf32>
    %146 = arith.select %126, %142, %116 : vector<8x32xi1>, vector<8x32xf32>
    %cst_49 = arith.constant 0.000000e+00 : f32
    %147 = vector.broadcast %cst_49 : f32 to vector<8x32xf32>
    %148 = arith.select %126, %144, %147 : vector<8x32xi1>, vector<8x32xf32>
    %149 = vector.extract_strided_slice %148 {offsets = [0, 0], sizes = [8, 16], strides = [1, 1]} : vector<8x32xf32> to vector<8x16xf32>
    %c32_50 = arith.constant 32 : index
    %c0_51 = arith.constant 0 : index
    %150 = vector.load %arg8[%c32_50, %c0_51] : memref<96x16xf32, #tpu.memory_space<vmem>>, vector<8x16xf32>
    tpu.vector_store %arg8[%c32_50, %c0_51], %149 {strides = array<i32>} : memref<96x16xf32, #tpu.memory_space<vmem>>, vector<8x16xf32>,
    %151 = vector.extract_strided_slice %148 {offsets = [0, 16], sizes = [8, 16], strides = [1, 1]} : vector<8x32xf32> to vector<8x16xf32>
    %c56 = arith.constant 56 : index
    %c0_52 = arith.constant 0 : index
    %152 = vector.load %arg9[%c56, %c0_52] : memref<96x16xf32, #tpu.memory_space<vmem>>, vector<8x16xf32>
    tpu.vector_store %arg9[%c56, %c0_52], %151 {strides = array<i32>} : memref<96x16xf32, #tpu.memory_space<vmem>>, vector<8x16xf32>,
    %c40 = arith.constant 40 : index
    %c0_53 = arith.constant 0 : index
    %153 = vector.load %arg0[%c40, %c0_53] : memref<96x128xf32, #tpu.memory_space<vmem>>, vector<8x128xf32>
    %c40_54 = arith.constant 40 : index
    %c0_55 = arith.constant 0 : index
    %154 = vector.load %arg1[%c40_54, %c0_55] : memref<96x32xf32, #tpu.memory_space<vmem>>, vector<8x32xf32>
    %cst_56 = arith.constant 0.000000e+00 : f32
    %155 = vector.broadcast %cst_56 : f32 to vector<8x32xf32>
    %156 = arith.cmpf ogt, %154, %155 : vector<8x32xf32>
    %cst_57 = arith.constant dense<0.000000e+00> : vector<8x128xf32>
    %157 = tpu.matmul %145, %0, %cst_57 {dimension_numbers = #tpu.dot_dimension_numbers<[1], [0], [0], [1], [0, 0, 1, 1], [], []>} : vector<8x32xf32>, vector<32x128xf32>, vector<8x128xf32> -> vector<8x128xf32>
    %158 = arith.addf %153, %157 : vector<8x128xf32>
    %159 = vector.extract_strided_slice %158 {offsets = [0, 0], sizes = [8, 96], strides = [1, 1]} : vector<8x128xf32> to vector<8x96xf32>
    %160 = arith.negf %159 : vector<8x96xf32>
    %161 = math.exp %160 : vector<8x96xf32>
    %cst_58 = arith.constant 1.000000e+00 : f32
    %162 = vector.broadcast %cst_58 : f32 to vector<8x96xf32>
    %163 = arith.addf %162, %161 : vector<8x96xf32>
    %164 = arith.divf %162, %163 : vector<8x96xf32>
    %165 = vector.extract_strided_slice %158 {offsets = [0, 96], sizes = [8, 32], strides = [1, 1]} : vector<8x128xf32> to vector<8x32xf32>
    %166 = math.tanh %165 : vector<8x32xf32>
    %167 = vector.extract_strided_slice %164 {offsets = [0, 0], sizes = [8, 32], strides = [1, 1]} : vector<8x96xf32> to vector<8x32xf32>
    %168 = vector.extract_strided_slice %164 {offsets = [0, 32], sizes = [8, 32], strides = [1, 1]} : vector<8x96xf32> to vector<8x32xf32>
    %169 = vector.extract_strided_slice %164 {offsets = [0, 64], sizes = [8, 32], strides = [1, 1]} : vector<8x96xf32> to vector<8x32xf32>
    %170 = arith.mulf %168, %146 : vector<8x32xf32>
    %171 = arith.mulf %167, %166 : vector<8x32xf32>
    %172 = arith.addf %170, %171 : vector<8x32xf32>
    %173 = math.tanh %172 : vector<8x32xf32>
    %174 = arith.mulf %169, %173 : vector<8x32xf32>
    %175 = arith.select %156, %174, %145 : vector<8x32xi1>, vector<8x32xf32>
    %176 = arith.select %156, %172, %146 : vector<8x32xi1>, vector<8x32xf32>
    %cst_59 = arith.constant 0.000000e+00 : f32
    %177 = vector.broadcast %cst_59 : f32 to vector<8x32xf32>
    %178 = arith.select %156, %174, %177 : vector<8x32xi1>, vector<8x32xf32>
    %179 = vector.extract_strided_slice %178 {offsets = [0, 0], sizes = [8, 16], strides = [1, 1]} : vector<8x32xf32> to vector<8x16xf32>
    %c40_60 = arith.constant 40 : index
    %c0_61 = arith.constant 0 : index
    %180 = vector.load %arg8[%c40_60, %c0_61] : memref<96x16xf32, #tpu.memory_space<vmem>>, vector<8x16xf32>
    tpu.vector_store %arg8[%c40_60, %c0_61], %179 {strides = array<i32>} : memref<96x16xf32, #tpu.memory_space<vmem>>, vector<8x16xf32>,
    %181 = vector.extract_strided_slice %178 {offsets = [0, 16], sizes = [8, 16], strides = [1, 1]} : vector<8x32xf32> to vector<8x16xf32>
    %c48 = arith.constant 48 : index
    %c0_62 = arith.constant 0 : index
    %182 = vector.load %arg9[%c48, %c0_62] : memref<96x16xf32, #tpu.memory_space<vmem>>, vector<8x16xf32>
    tpu.vector_store %arg9[%c48, %c0_62], %181 {strides = array<i32>} : memref<96x16xf32, #tpu.memory_space<vmem>>, vector<8x16xf32>,
    %c48_63 = arith.constant 48 : index
    %c0_64 = arith.constant 0 : index
    %183 = vector.load %arg0[%c48_63, %c0_64] : memref<96x128xf32, #tpu.memory_space<vmem>>, vector<8x128xf32>
    %c48_65 = arith.constant 48 : index
    %c0_66 = arith.constant 0 : index
    %184 = vector.load %arg1[%c48_65, %c0_66] : memref<96x32xf32, #tpu.memory_space<vmem>>, vector<8x32xf32>
    %cst_67 = arith.constant 0.000000e+00 : f32
    %185 = vector.broadcast %cst_67 : f32 to vector<8x32xf32>
    %186 = arith.cmpf ogt, %184, %185 : vector<8x32xf32>
    %cst_68 = arith.constant dense<0.000000e+00> : vector<8x128xf32>
    %187 = tpu.matmul %175, %0, %cst_68 {dimension_numbers = #tpu.dot_dimension_numbers<[1], [0], [0], [1], [0, 0, 1, 1], [], []>} : vector<8x32xf32>, vector<32x128xf32>, vector<8x128xf32> -> vector<8x128xf32>
    %188 = arith.addf %183, %187 : vector<8x128xf32>
    %189 = vector.extract_strided_slice %188 {offsets = [0, 0], sizes = [8, 96], strides = [1, 1]} : vector<8x128xf32> to vector<8x96xf32>
    %190 = arith.negf %189 : vector<8x96xf32>
    %191 = math.exp %190 : vector<8x96xf32>
    %cst_69 = arith.constant 1.000000e+00 : f32
    %192 = vector.broadcast %cst_69 : f32 to vector<8x96xf32>
    %193 = arith.addf %192, %191 : vector<8x96xf32>
    %194 = arith.divf %192, %193 : vector<8x96xf32>
    %195 = vector.extract_strided_slice %188 {offsets = [0, 96], sizes = [8, 32], strides = [1, 1]} : vector<8x128xf32> to vector<8x32xf32>
    %196 = math.tanh %195 : vector<8x32xf32>
    %197 = vector.extract_strided_slice %194 {offsets = [0, 0], sizes = [8, 32], strides = [1, 1]} : vector<8x96xf32> to vector<8x32xf32>
    %198 = vector.extract_strided_slice %194 {offsets = [0, 32], sizes = [8, 32], strides = [1, 1]} : vector<8x96xf32> to vector<8x32xf32>
    %199 = vector.extract_strided_slice %194 {offsets = [0, 64], sizes = [8, 32], strides = [1, 1]} : vector<8x96xf32> to vector<8x32xf32>
    %200 = arith.mulf %198, %176 : vector<8x32xf32>
    %201 = arith.mulf %197, %196 : vector<8x32xf32>
    %202 = arith.addf %200, %201 : vector<8x32xf32>
    %203 = math.tanh %202 : vector<8x32xf32>
    %204 = arith.mulf %199, %203 : vector<8x32xf32>
    %205 = arith.select %186, %204, %175 : vector<8x32xi1>, vector<8x32xf32>
    %206 = arith.select %186, %202, %176 : vector<8x32xi1>, vector<8x32xf32>
    %cst_70 = arith.constant 0.000000e+00 : f32
    %207 = vector.broadcast %cst_70 : f32 to vector<8x32xf32>
    %208 = arith.select %186, %204, %207 : vector<8x32xi1>, vector<8x32xf32>
    %209 = vector.extract_strided_slice %208 {offsets = [0, 0], sizes = [8, 16], strides = [1, 1]} : vector<8x32xf32> to vector<8x16xf32>
    %c48_71 = arith.constant 48 : index
    %c0_72 = arith.constant 0 : index
    %210 = vector.load %arg8[%c48_71, %c0_72] : memref<96x16xf32, #tpu.memory_space<vmem>>, vector<8x16xf32>
    tpu.vector_store %arg8[%c48_71, %c0_72], %209 {strides = array<i32>} : memref<96x16xf32, #tpu.memory_space<vmem>>, vector<8x16xf32>,
    %211 = vector.extract_strided_slice %208 {offsets = [0, 16], sizes = [8, 16], strides = [1, 1]} : vector<8x32xf32> to vector<8x16xf32>
    %c40_73 = arith.constant 40 : index
    %c0_74 = arith.constant 0 : index
    %212 = vector.load %arg9[%c40_73, %c0_74] : memref<96x16xf32, #tpu.memory_space<vmem>>, vector<8x16xf32>
    tpu.vector_store %arg9[%c40_73, %c0_74], %211 {strides = array<i32>} : memref<96x16xf32, #tpu.memory_space<vmem>>, vector<8x16xf32>,
    %c56_75 = arith.constant 56 : index
    %c0_76 = arith.constant 0 : index
    %213 = vector.load %arg0[%c56_75, %c0_76] : memref<96x128xf32, #tpu.memory_space<vmem>>, vector<8x128xf32>
    %c56_77 = arith.constant 56 : index
    %c0_78 = arith.constant 0 : index
    %214 = vector.load %arg1[%c56_77, %c0_78] : memref<96x32xf32, #tpu.memory_space<vmem>>, vector<8x32xf32>
    %cst_79 = arith.constant 0.000000e+00 : f32
    %215 = vector.broadcast %cst_79 : f32 to vector<8x32xf32>
    %216 = arith.cmpf ogt, %214, %215 : vector<8x32xf32>
    %cst_80 = arith.constant dense<0.000000e+00> : vector<8x128xf32>
    %217 = tpu.matmul %205, %0, %cst_80 {dimension_numbers = #tpu.dot_dimension_numbers<[1], [0], [0], [1], [0, 0, 1, 1], [], []>} : vector<8x32xf32>, vector<32x128xf32>, vector<8x128xf32> -> vector<8x128xf32>
    %218 = arith.addf %213, %217 : vector<8x128xf32>
    %219 = vector.extract_strided_slice %218 {offsets = [0, 0], sizes = [8, 96], strides = [1, 1]} : vector<8x128xf32> to vector<8x96xf32>
    %220 = arith.negf %219 : vector<8x96xf32>
    %221 = math.exp %220 : vector<8x96xf32>
    %cst_81 = arith.constant 1.000000e+00 : f32
    %222 = vector.broadcast %cst_81 : f32 to vector<8x96xf32>
    %223 = arith.addf %222, %221 : vector<8x96xf32>
    %224 = arith.divf %222, %223 : vector<8x96xf32>
    %225 = vector.extract_strided_slice %218 {offsets = [0, 96], sizes = [8, 32], strides = [1, 1]} : vector<8x128xf32> to vector<8x32xf32>
    %226 = math.tanh %225 : vector<8x32xf32>
    %227 = vector.extract_strided_slice %224 {offsets = [0, 0], sizes = [8, 32], strides = [1, 1]} : vector<8x96xf32> to vector<8x32xf32>
    %228 = vector.extract_strided_slice %224 {offsets = [0, 32], sizes = [8, 32], strides = [1, 1]} : vector<8x96xf32> to vector<8x32xf32>
    %229 = vector.extract_strided_slice %224 {offsets = [0, 64], sizes = [8, 32], strides = [1, 1]} : vector<8x96xf32> to vector<8x32xf32>
    %230 = arith.mulf %228, %206 : vector<8x32xf32>
    %231 = arith.mulf %227, %226 : vector<8x32xf32>
    %232 = arith.addf %230, %231 : vector<8x32xf32>
    %233 = math.tanh %232 : vector<8x32xf32>
    %234 = arith.mulf %229, %233 : vector<8x32xf32>
    %235 = arith.select %216, %234, %205 : vector<8x32xi1>, vector<8x32xf32>
    %236 = arith.select %216, %232, %206 : vector<8x32xi1>, vector<8x32xf32>
    %cst_82 = arith.constant 0.000000e+00 : f32
    %237 = vector.broadcast %cst_82 : f32 to vector<8x32xf32>
    %238 = arith.select %216, %234, %237 : vector<8x32xi1>, vector<8x32xf32>
    %239 = vector.extract_strided_slice %238 {offsets = [0, 0], sizes = [8, 16], strides = [1, 1]} : vector<8x32xf32> to vector<8x16xf32>
    %c56_83 = arith.constant 56 : index
    %c0_84 = arith.constant 0 : index
    %240 = vector.load %arg8[%c56_83, %c0_84] : memref<96x16xf32, #tpu.memory_space<vmem>>, vector<8x16xf32>
    tpu.vector_store %arg8[%c56_83, %c0_84], %239 {strides = array<i32>} : memref<96x16xf32, #tpu.memory_space<vmem>>, vector<8x16xf32>,
    %241 = vector.extract_strided_slice %238 {offsets = [0, 16], sizes = [8, 16], strides = [1, 1]} : vector<8x32xf32> to vector<8x16xf32>
    %c32_85 = arith.constant 32 : index
    %c0_86 = arith.constant 0 : index
    %242 = vector.load %arg9[%c32_85, %c0_86] : memref<96x16xf32, #tpu.memory_space<vmem>>, vector<8x16xf32>
    tpu.vector_store %arg9[%c32_85, %c0_86], %241 {strides = array<i32>} : memref<96x16xf32, #tpu.memory_space<vmem>>, vector<8x16xf32>,
    %c64_87 = arith.constant 64 : index
    %c0_88 = arith.constant 0 : index
    %243 = vector.load %arg0[%c64_87, %c0_88] : memref<96x128xf32, #tpu.memory_space<vmem>>, vector<8x128xf32>
    %c64_89 = arith.constant 64 : index
    %c0_90 = arith.constant 0 : index
    %244 = vector.load %arg1[%c64_89, %c0_90] : memref<96x32xf32, #tpu.memory_space<vmem>>, vector<8x32xf32>
    %cst_91 = arith.constant 0.000000e+00 : f32
    %245 = vector.broadcast %cst_91 : f32 to vector<8x32xf32>
    %246 = arith.cmpf ogt, %244, %245 : vector<8x32xf32>
    %cst_92 = arith.constant dense<0.000000e+00> : vector<8x128xf32>
    %247 = tpu.matmul %235, %0, %cst_92 {dimension_numbers = #tpu.dot_dimension_numbers<[1], [0], [0], [1], [0, 0, 1, 1], [], []>} : vector<8x32xf32>, vector<32x128xf32>, vector<8x128xf32> -> vector<8x128xf32>
    %248 = arith.addf %243, %247 : vector<8x128xf32>
    %249 = vector.extract_strided_slice %248 {offsets = [0, 0], sizes = [8, 96], strides = [1, 1]} : vector<8x128xf32> to vector<8x96xf32>
    %250 = arith.negf %249 : vector<8x96xf32>
    %251 = math.exp %250 : vector<8x96xf32>
    %cst_93 = arith.constant 1.000000e+00 : f32
    %252 = vector.broadcast %cst_93 : f32 to vector<8x96xf32>
    %253 = arith.addf %252, %251 : vector<8x96xf32>
    %254 = arith.divf %252, %253 : vector<8x96xf32>
    %255 = vector.extract_strided_slice %248 {offsets = [0, 96], sizes = [8, 32], strides = [1, 1]} : vector<8x128xf32> to vector<8x32xf32>
    %256 = math.tanh %255 : vector<8x32xf32>
    %257 = vector.extract_strided_slice %254 {offsets = [0, 0], sizes = [8, 32], strides = [1, 1]} : vector<8x96xf32> to vector<8x32xf32>
    %258 = vector.extract_strided_slice %254 {offsets = [0, 32], sizes = [8, 32], strides = [1, 1]} : vector<8x96xf32> to vector<8x32xf32>
    %259 = vector.extract_strided_slice %254 {offsets = [0, 64], sizes = [8, 32], strides = [1, 1]} : vector<8x96xf32> to vector<8x32xf32>
    %260 = arith.mulf %258, %236 : vector<8x32xf32>
    %261 = arith.mulf %257, %256 : vector<8x32xf32>
    %262 = arith.addf %260, %261 : vector<8x32xf32>
    %263 = math.tanh %262 : vector<8x32xf32>
    %264 = arith.mulf %259, %263 : vector<8x32xf32>
    %265 = arith.select %246, %264, %235 : vector<8x32xi1>, vector<8x32xf32>
    %266 = arith.select %246, %262, %236 : vector<8x32xi1>, vector<8x32xf32>
    %cst_94 = arith.constant 0.000000e+00 : f32
    %267 = vector.broadcast %cst_94 : f32 to vector<8x32xf32>
    %268 = arith.select %246, %264, %267 : vector<8x32xi1>, vector<8x32xf32>
    %269 = vector.extract_strided_slice %268 {offsets = [0, 0], sizes = [8, 16], strides = [1, 1]} : vector<8x32xf32> to vector<8x16xf32>
    %c64_95 = arith.constant 64 : index
    %c0_96 = arith.constant 0 : index
    %270 = vector.load %arg8[%c64_95, %c0_96] : memref<96x16xf32, #tpu.memory_space<vmem>>, vector<8x16xf32>
    tpu.vector_store %arg8[%c64_95, %c0_96], %269 {strides = array<i32>} : memref<96x16xf32, #tpu.memory_space<vmem>>, vector<8x16xf32>,
    %271 = vector.extract_strided_slice %268 {offsets = [0, 16], sizes = [8, 16], strides = [1, 1]} : vector<8x32xf32> to vector<8x16xf32>
    %c24_97 = arith.constant 24 : index
    %c0_98 = arith.constant 0 : index
    %272 = vector.load %arg9[%c24_97, %c0_98] : memref<96x16xf32, #tpu.memory_space<vmem>>, vector<8x16xf32>
    tpu.vector_store %arg9[%c24_97, %c0_98], %271 {strides = array<i32>} : memref<96x16xf32, #tpu.memory_space<vmem>>, vector<8x16xf32>,
    %c72_99 = arith.constant 72 : index
    %c0_100 = arith.constant 0 : index
    %273 = vector.load %arg0[%c72_99, %c0_100] : memref<96x128xf32, #tpu.memory_space<vmem>>, vector<8x128xf32>
    %c72_101 = arith.constant 72 : index
    %c0_102 = arith.constant 0 : index
    %274 = vector.load %arg1[%c72_101, %c0_102] : memref<96x32xf32, #tpu.memory_space<vmem>>, vector<8x32xf32>
    %cst_103 = arith.constant 0.000000e+00 : f32
    %275 = vector.broadcast %cst_103 : f32 to vector<8x32xf32>
    %276 = arith.cmpf ogt, %274, %275 : vector<8x32xf32>
    %cst_104 = arith.constant dense<0.000000e+00> : vector<8x128xf32>
    %277 = tpu.matmul %265, %0, %cst_104 {dimension_numbers = #tpu.dot_dimension_numbers<[1], [0], [0], [1], [0, 0, 1, 1], [], []>} : vector<8x32xf32>, vector<32x128xf32>, vector<8x128xf32> -> vector<8x128xf32>
    %278 = arith.addf %273, %277 : vector<8x128xf32>
    %279 = vector.extract_strided_slice %278 {offsets = [0, 0], sizes = [8, 96], strides = [1, 1]} : vector<8x128xf32> to vector<8x96xf32>
    %280 = arith.negf %279 : vector<8x96xf32>
    %281 = math.exp %280 : vector<8x96xf32>
    %cst_105 = arith.constant 1.000000e+00 : f32
    %282 = vector.broadcast %cst_105 : f32 to vector<8x96xf32>
    %283 = arith.addf %282, %281 : vector<8x96xf32>
    %284 = arith.divf %282, %283 : vector<8x96xf32>
    %285 = vector.extract_strided_slice %278 {offsets = [0, 96], sizes = [8, 32], strides = [1, 1]} : vector<8x128xf32> to vector<8x32xf32>
    %286 = math.tanh %285 : vector<8x32xf32>
    %287 = vector.extract_strided_slice %284 {offsets = [0, 0], sizes = [8, 32], strides = [1, 1]} : vector<8x96xf32> to vector<8x32xf32>
    %288 = vector.extract_strided_slice %284 {offsets = [0, 32], sizes = [8, 32], strides = [1, 1]} : vector<8x96xf32> to vector<8x32xf32>
    %289 = vector.extract_strided_slice %284 {offsets = [0, 64], sizes = [8, 32], strides = [1, 1]} : vector<8x96xf32> to vector<8x32xf32>
    %290 = arith.mulf %288, %266 : vector<8x32xf32>
    %291 = arith.mulf %287, %286 : vector<8x32xf32>
    %292 = arith.addf %290, %291 : vector<8x32xf32>
    %293 = math.tanh %292 : vector<8x32xf32>
    %294 = arith.mulf %289, %293 : vector<8x32xf32>
    %295 = arith.select %276, %294, %265 : vector<8x32xi1>, vector<8x32xf32>
    %296 = arith.select %276, %292, %266 : vector<8x32xi1>, vector<8x32xf32>
    %cst_106 = arith.constant 0.000000e+00 : f32
    %297 = vector.broadcast %cst_106 : f32 to vector<8x32xf32>
    %298 = arith.select %276, %294, %297 : vector<8x32xi1>, vector<8x32xf32>
    %299 = vector.extract_strided_slice %298 {offsets = [0, 0], sizes = [8, 16], strides = [1, 1]} : vector<8x32xf32> to vector<8x16xf32>
    %c72_107 = arith.constant 72 : index
    %c0_108 = arith.constant 0 : index
    %300 = vector.load %arg8[%c72_107, %c0_108] : memref<96x16xf32, #tpu.memory_space<vmem>>, vector<8x16xf32>
    tpu.vector_store %arg8[%c72_107, %c0_108], %299 {strides = array<i32>} : memref<96x16xf32, #tpu.memory_space<vmem>>, vector<8x16xf32>,
    %301 = vector.extract_strided_slice %298 {offsets = [0, 16], sizes = [8, 16], strides = [1, 1]} : vector<8x32xf32> to vector<8x16xf32>
    %c16_109 = arith.constant 16 : index
    %c0_110 = arith.constant 0 : index
    %302 = vector.load %arg9[%c16_109, %c0_110] : memref<96x16xf32, #tpu.memory_space<vmem>>, vector<8x16xf32>
    tpu.vector_store %arg9[%c16_109, %c0_110], %301 {strides = array<i32>} : memref<96x16xf32, #tpu.memory_space<vmem>>, vector<8x16xf32>,
    %c80_111 = arith.constant 80 : index
    %c0_112 = arith.constant 0 : index
    %303 = vector.load %arg0[%c80_111, %c0_112] : memref<96x128xf32, #tpu.memory_space<vmem>>, vector<8x128xf32>
    %c80_113 = arith.constant 80 : index
    %c0_114 = arith.constant 0 : index
    %304 = vector.load %arg1[%c80_113, %c0_114] : memref<96x32xf32, #tpu.memory_space<vmem>>, vector<8x32xf32>
    %cst_115 = arith.constant 0.000000e+00 : f32
    %305 = vector.broadcast %cst_115 : f32 to vector<8x32xf32>
    %306 = arith.cmpf ogt, %304, %305 : vector<8x32xf32>
    %cst_116 = arith.constant dense<0.000000e+00> : vector<8x128xf32>
    %307 = tpu.matmul %295, %0, %cst_116 {dimension_numbers = #tpu.dot_dimension_numbers<[1], [0], [0], [1], [0, 0, 1, 1], [], []>} : vector<8x32xf32>, vector<32x128xf32>, vector<8x128xf32> -> vector<8x128xf32>
    %308 = arith.addf %303, %307 : vector<8x128xf32>
    %309 = vector.extract_strided_slice %308 {offsets = [0, 0], sizes = [8, 96], strides = [1, 1]} : vector<8x128xf32> to vector<8x96xf32>
    %310 = arith.negf %309 : vector<8x96xf32>
    %311 = math.exp %310 : vector<8x96xf32>
    %cst_117 = arith.constant 1.000000e+00 : f32
    %312 = vector.broadcast %cst_117 : f32 to vector<8x96xf32>
    %313 = arith.addf %312, %311 : vector<8x96xf32>
    %314 = arith.divf %312, %313 : vector<8x96xf32>
    %315 = vector.extract_strided_slice %308 {offsets = [0, 96], sizes = [8, 32], strides = [1, 1]} : vector<8x128xf32> to vector<8x32xf32>
    %316 = math.tanh %315 : vector<8x32xf32>
    %317 = vector.extract_strided_slice %314 {offsets = [0, 0], sizes = [8, 32], strides = [1, 1]} : vector<8x96xf32> to vector<8x32xf32>
    %318 = vector.extract_strided_slice %314 {offsets = [0, 32], sizes = [8, 32], strides = [1, 1]} : vector<8x96xf32> to vector<8x32xf32>
    %319 = vector.extract_strided_slice %314 {offsets = [0, 64], sizes = [8, 32], strides = [1, 1]} : vector<8x96xf32> to vector<8x32xf32>
    %320 = arith.mulf %318, %296 : vector<8x32xf32>
    %321 = arith.mulf %317, %316 : vector<8x32xf32>
    %322 = arith.addf %320, %321 : vector<8x32xf32>
    %323 = math.tanh %322 : vector<8x32xf32>
    %324 = arith.mulf %319, %323 : vector<8x32xf32>
    %325 = arith.select %306, %324, %295 : vector<8x32xi1>, vector<8x32xf32>
    %326 = arith.select %306, %322, %296 : vector<8x32xi1>, vector<8x32xf32>
    %cst_118 = arith.constant 0.000000e+00 : f32
    %327 = vector.broadcast %cst_118 : f32 to vector<8x32xf32>
    %328 = arith.select %306, %324, %327 : vector<8x32xi1>, vector<8x32xf32>
    %329 = vector.extract_strided_slice %328 {offsets = [0, 0], sizes = [8, 16], strides = [1, 1]} : vector<8x32xf32> to vector<8x16xf32>
    %c80_119 = arith.constant 80 : index
    %c0_120 = arith.constant 0 : index
    %330 = vector.load %arg8[%c80_119, %c0_120] : memref<96x16xf32, #tpu.memory_space<vmem>>, vector<8x16xf32>
    tpu.vector_store %arg8[%c80_119, %c0_120], %329 {strides = array<i32>} : memref<96x16xf32, #tpu.memory_space<vmem>>, vector<8x16xf32>,
    %331 = vector.extract_strided_slice %328 {offsets = [0, 16], sizes = [8, 16], strides = [1, 1]} : vector<8x32xf32> to vector<8x16xf32>
    %c8_121 = arith.constant 8 : index
    %c0_122 = arith.constant 0 : index
    %332 = vector.load %arg9[%c8_121, %c0_122] : memref<96x16xf32, #tpu.memory_space<vmem>>, vector<8x16xf32>
    tpu.vector_store %arg9[%c8_121, %c0_122], %331 {strides = array<i32>} : memref<96x16xf32, #tpu.memory_space<vmem>>, vector<8x16xf32>,
    %c88_123 = arith.constant 88 : index
    %c0_124 = arith.constant 0 : index
    %333 = vector.load %arg0[%c88_123, %c0_124] : memref<96x128xf32, #tpu.memory_space<vmem>>, vector<8x128xf32>
    %c88_125 = arith.constant 88 : index
    %c0_126 = arith.constant 0 : index
    %334 = vector.load %arg1[%c88_125, %c0_126] : memref<96x32xf32, #tpu.memory_space<vmem>>, vector<8x32xf32>
    %cst_127 = arith.constant 0.000000e+00 : f32
    %335 = vector.broadcast %cst_127 : f32 to vector<8x32xf32>
    %336 = arith.cmpf ogt, %334, %335 : vector<8x32xf32>
    %cst_128 = arith.constant dense<0.000000e+00> : vector<8x128xf32>
    %337 = tpu.matmul %325, %0, %cst_128 {dimension_numbers = #tpu.dot_dimension_numbers<[1], [0], [0], [1], [0, 0, 1, 1], [], []>} : vector<8x32xf32>, vector<32x128xf32>, vector<8x128xf32> -> vector<8x128xf32>
    %338 = arith.addf %333, %337 : vector<8x128xf32>
    %339 = vector.extract_strided_slice %338 {offsets = [0, 0], sizes = [8, 96], strides = [1, 1]} : vector<8x128xf32> to vector<8x96xf32>
    %340 = arith.negf %339 : vector<8x96xf32>
    %341 = math.exp %340 : vector<8x96xf32>
    %cst_129 = arith.constant 1.000000e+00 : f32
    %342 = vector.broadcast %cst_129 : f32 to vector<8x96xf32>
    %343 = arith.addf %342, %341 : vector<8x96xf32>
    %344 = arith.divf %342, %343 : vector<8x96xf32>
    %345 = vector.extract_strided_slice %338 {offsets = [0, 96], sizes = [8, 32], strides = [1, 1]} : vector<8x128xf32> to vector<8x32xf32>
    %346 = math.tanh %345 : vector<8x32xf32>
    %347 = vector.extract_strided_slice %344 {offsets = [0, 0], sizes = [8, 32], strides = [1, 1]} : vector<8x96xf32> to vector<8x32xf32>
    %348 = vector.extract_strided_slice %344 {offsets = [0, 32], sizes = [8, 32], strides = [1, 1]} : vector<8x96xf32> to vector<8x32xf32>
    %349 = vector.extract_strided_slice %344 {offsets = [0, 64], sizes = [8, 32], strides = [1, 1]} : vector<8x96xf32> to vector<8x32xf32>
    %350 = arith.mulf %348, %326 : vector<8x32xf32>
    %351 = arith.mulf %347, %346 : vector<8x32xf32>
    %352 = arith.addf %350, %351 : vector<8x32xf32>
    %353 = math.tanh %352 : vector<8x32xf32>
    %354 = arith.mulf %349, %353 : vector<8x32xf32>
    %cst_130 = arith.constant 0.000000e+00 : f32
    %355 = vector.broadcast %cst_130 : f32 to vector<8x32xf32>
    %356 = arith.select %336, %354, %355 : vector<8x32xi1>, vector<8x32xf32>
    %357 = vector.extract_strided_slice %356 {offsets = [0, 0], sizes = [8, 16], strides = [1, 1]} : vector<8x32xf32> to vector<8x16xf32>
    %c88_131 = arith.constant 88 : index
    %c0_132 = arith.constant 0 : index
    %358 = vector.load %arg8[%c88_131, %c0_132] : memref<96x16xf32, #tpu.memory_space<vmem>>, vector<8x16xf32>
    tpu.vector_store %arg8[%c88_131, %c0_132], %357 {strides = array<i32>} : memref<96x16xf32, #tpu.memory_space<vmem>>, vector<8x16xf32>,
    %359 = vector.extract_strided_slice %356 {offsets = [0, 16], sizes = [8, 16], strides = [1, 1]} : vector<8x32xf32> to vector<8x16xf32>
    %c0_133 = arith.constant 0 : index
    %c0_134 = arith.constant 0 : index
    %360 = vector.load %arg9[%c0_133, %c0_134] : memref<96x16xf32, #tpu.memory_space<vmem>>, vector<8x16xf32>
    tpu.vector_store %arg9[%c0_133, %c0_134], %359 {strides = array<i32>} : memref<96x16xf32, #tpu.memory_space<vmem>>, vector<8x16xf32>,
    %c0_135 = arith.constant 0 : index
    %c0_136 = arith.constant 0 : index
    %361 = vector.load %arg8[%c0_135, %c0_136] : memref<96x16xf32, #tpu.memory_space<vmem>>, vector<96x16xf32>
    %c0_137 = arith.constant 0 : index
    %c0_138 = arith.constant 0 : index
    %362 = vector.load %arg3[%c0_137, %c0_138] : memref<16x6xf32, #tpu.memory_space<vmem>>, vector<16x6xf32>
    %cst_139 = arith.constant dense<0.000000e+00> : vector<96x6xf32>
    %363 = tpu.matmul %361, %362, %cst_139 {dimension_numbers = #tpu.dot_dimension_numbers<[1], [0], [0], [1], [0, 0, 1, 1], [], []>} : vector<96x16xf32>, vector<16x6xf32>, vector<96x6xf32> -> vector<96x6xf32>
    %c0_140 = arith.constant 0 : index
    %c0_141 = arith.constant 0 : index
    %364 = vector.load %arg9[%c0_140, %c0_141] : memref<96x16xf32, #tpu.memory_space<vmem>>, vector<96x16xf32>
    %c0_142 = arith.constant 0 : index
    %c0_143 = arith.constant 0 : index
    %365 = vector.load %arg4[%c0_142, %c0_143] : memref<16x6xf32, #tpu.memory_space<vmem>>, vector<16x6xf32>
    %cst_144 = arith.constant dense<0.000000e+00> : vector<96x6xf32>
    %366 = tpu.matmul %364, %365, %cst_144 {dimension_numbers = #tpu.dot_dimension_numbers<[1], [0], [0], [1], [0, 0, 1, 1], [], []>} : vector<96x16xf32>, vector<16x6xf32>, vector<96x6xf32> -> vector<96x6xf32>
    %367 = arith.addf %363, %366 : vector<96x6xf32>
    %c0_145 = arith.constant 0 : index
    %c0_146 = arith.constant 0 : index
    %368 = vector.load %arg5[%c0_145, %c0_146] : memref<1x6xf32, #tpu.memory_space<vmem>>, vector<1x6xf32>
    %369 = vector.broadcast %368 : vector<1x6xf32> to vector<96x6xf32>
    %370 = arith.addf %367, %369 : vector<96x6xf32>
    %371 = vector.extract_strided_slice %370 {offsets = [0, 0], sizes = [8, 6], strides = [1, 1]} : vector<96x6xf32> to vector<8x6xf32>
    %372 = vector.extract_strided_slice %370 {offsets = [8, 0], sizes = [8, 6], strides = [1, 1]} : vector<96x6xf32> to vector<8x6xf32>
    %373 = vector.extract_strided_slice %370 {offsets = [16, 0], sizes = [8, 6], strides = [1, 1]} : vector<96x6xf32> to vector<8x6xf32>
    %374 = vector.extract_strided_slice %370 {offsets = [24, 0], sizes = [8, 6], strides = [1, 1]} : vector<96x6xf32> to vector<8x6xf32>
    %375 = vector.extract_strided_slice %370 {offsets = [32, 0], sizes = [8, 6], strides = [1, 1]} : vector<96x6xf32> to vector<8x6xf32>
    %376 = vector.extract_strided_slice %370 {offsets = [40, 0], sizes = [8, 6], strides = [1, 1]} : vector<96x6xf32> to vector<8x6xf32>
    %377 = vector.extract_strided_slice %370 {offsets = [48, 0], sizes = [8, 6], strides = [1, 1]} : vector<96x6xf32> to vector<8x6xf32>
    %378 = vector.extract_strided_slice %370 {offsets = [56, 0], sizes = [8, 6], strides = [1, 1]} : vector<96x6xf32> to vector<8x6xf32>
    %379 = vector.extract_strided_slice %370 {offsets = [64, 0], sizes = [8, 6], strides = [1, 1]} : vector<96x6xf32> to vector<8x6xf32>
    %380 = vector.extract_strided_slice %370 {offsets = [72, 0], sizes = [8, 6], strides = [1, 1]} : vector<96x6xf32> to vector<8x6xf32>
    %381 = vector.extract_strided_slice %370 {offsets = [80, 0], sizes = [8, 6], strides = [1, 1]} : vector<96x6xf32> to vector<8x6xf32>
    %382 = vector.extract_strided_slice %370 {offsets = [88, 0], sizes = [8, 6], strides = [1, 1]} : vector<96x6xf32> to vector<8x6xf32>
    %383 = arith.maximumf %371, %372 : vector<8x6xf32>
    %384 = arith.maximumf %383, %373 : vector<8x6xf32>
    %385 = arith.maximumf %384, %374 : vector<8x6xf32>
    %386 = arith.maximumf %385, %375 : vector<8x6xf32>
    %387 = arith.maximumf %386, %376 : vector<8x6xf32>
    %388 = arith.maximumf %387, %377 : vector<8x6xf32>
    %389 = arith.maximumf %388, %378 : vector<8x6xf32>
    %390 = arith.maximumf %389, %379 : vector<8x6xf32>
    %391 = arith.maximumf %390, %380 : vector<8x6xf32>
    %392 = arith.maximumf %391, %381 : vector<8x6xf32>
    %393 = arith.maximumf %392, %382 : vector<8x6xf32>
    %394 = arith.subf %371, %393 : vector<8x6xf32>
    %395 = math.exp %394 : vector<8x6xf32>
    %396 = arith.subf %372, %393 : vector<8x6xf32>
    %397 = math.exp %396 : vector<8x6xf32>
    %398 = arith.subf %373, %393 : vector<8x6xf32>
    %399 = math.exp %398 : vector<8x6xf32>
    %400 = arith.subf %374, %393 : vector<8x6xf32>
    %401 = math.exp %400 : vector<8x6xf32>
    %402 = arith.subf %375, %393 : vector<8x6xf32>
    %403 = math.exp %402 : vector<8x6xf32>
    %404 = arith.subf %376, %393 : vector<8x6xf32>
    %405 = math.exp %404 : vector<8x6xf32>
    %406 = arith.subf %377, %393 : vector<8x6xf32>
    %407 = math.exp %406 : vector<8x6xf32>
    %408 = arith.subf %378, %393 : vector<8x6xf32>
    %409 = math.exp %408 : vector<8x6xf32>
    %410 = arith.subf %379, %393 : vector<8x6xf32>
    %411 = math.exp %410 : vector<8x6xf32>
    %412 = arith.subf %380, %393 : vector<8x6xf32>
    %413 = math.exp %412 : vector<8x6xf32>
    %414 = arith.subf %381, %393 : vector<8x6xf32>
    %415 = math.exp %414 : vector<8x6xf32>
    %416 = arith.subf %382, %393 : vector<8x6xf32>
    %417 = math.exp %416 : vector<8x6xf32>
    %418 = arith.addf %395, %397 : vector<8x6xf32>
    %419 = arith.addf %418, %399 : vector<8x6xf32>
    %420 = arith.addf %419, %401 : vector<8x6xf32>
    %421 = arith.addf %420, %403 : vector<8x6xf32>
    %422 = arith.addf %421, %405 : vector<8x6xf32>
    %423 = arith.addf %422, %407 : vector<8x6xf32>
    %424 = arith.addf %423, %409 : vector<8x6xf32>
    %425 = arith.addf %424, %411 : vector<8x6xf32>
    %426 = arith.addf %425, %413 : vector<8x6xf32>
    %427 = arith.addf %426, %415 : vector<8x6xf32>
    %428 = arith.addf %427, %417 : vector<8x6xf32>
    %429 = math.log %428 : vector<8x6xf32>
    %430 = arith.addf %393, %429 : vector<8x6xf32>
    %431 = arith.subf %371, %430 : vector<8x6xf32>
    %432 = arith.subf %372, %430 : vector<8x6xf32>
    %433 = arith.subf %373, %430 : vector<8x6xf32>
    %434 = arith.subf %374, %430 : vector<8x6xf32>
    %435 = arith.subf %375, %430 : vector<8x6xf32>
    %436 = arith.subf %376, %430 : vector<8x6xf32>
    %437 = arith.subf %377, %430 : vector<8x6xf32>
    %438 = arith.subf %378, %430 : vector<8x6xf32>
    %439 = arith.subf %379, %430 : vector<8x6xf32>
    %440 = arith.subf %380, %430 : vector<8x6xf32>
    %441 = arith.subf %381, %430 : vector<8x6xf32>
    %442 = arith.subf %382, %430 : vector<8x6xf32>
    %cst_147 = arith.constant 0.000000e+00 : f32
    %443 = vector.broadcast %cst_147 : f32 to vector<8x56xf32>
    %444 = tpu.concatenate %431, %432, %433, %434, %435, %436, %437, %438, %439, %440, %441, %442, %443 in 1 : vector<8x6xf32>, vector<8x6xf32>, vector<8x6xf32>, vector<8x6xf32>, vector<8x6xf32>, vector<8x6xf32>, vector<8x6xf32>, vector<8x6xf32>, vector<8x6xf32>, vector<8x6xf32>, vector<8x6xf32>, vector<8x6xf32>, vector<8x56xf32> -> vector<8x128xf32>
    %c0_148 = arith.constant 0 : index
    %c0_149 = arith.constant 0 : index
    %445 = vector.load %arg6[%c0_148, %c0_149] : memref<8x128xf32, #tpu.memory_space<vmem>>, vector<8x128xf32>
    tpu.vector_store %arg6[%c0_148, %c0_149], %444 {strides = array<i32>} : memref<8x128xf32, #tpu.memory_space<vmem>>, vector<8x128xf32>,
    %446 = vector.extract_strided_slice %444 {offsets = [0, 0], sizes = [8, 12], strides = [1, 1]} : vector<8x128xf32> to vector<8x12xf32>
    %c0_i32 = arith.constant 0 : i32
    %447 = vector.broadcast %c0_i32 : i32 to vector<8x12xi32>
    %448 = vector.extract_strided_slice %444 {offsets = [0, 12], sizes = [8, 12], strides = [1, 1]} : vector<8x128xf32> to vector<8x12xf32>
    %449 = arith.cmpf ogt, %448, %446 : vector<8x12xf32>
    %c1_i32 = arith.constant 1 : i32
    %450 = vector.broadcast %c1_i32 : i32 to vector<8x12xi32>
    %451 = arith.select %449, %450, %447 : vector<8x12xi1>, vector<8x12xi32>
    %452 = arith.select %449, %448, %446 : vector<8x12xi1>, vector<8x12xf32>
    %453 = vector.extract_strided_slice %444 {offsets = [0, 24], sizes = [8, 12], strides = [1, 1]} : vector<8x128xf32> to vector<8x12xf32>
    %454 = arith.cmpf ogt, %453, %452 : vector<8x12xf32>
    %c2_i32 = arith.constant 2 : i32
    %455 = vector.broadcast %c2_i32 : i32 to vector<8x12xi32>
    %456 = arith.select %454, %455, %451 : vector<8x12xi1>, vector<8x12xi32>
    %457 = arith.select %454, %453, %452 : vector<8x12xi1>, vector<8x12xf32>
    %458 = vector.extract_strided_slice %444 {offsets = [0, 36], sizes = [8, 12], strides = [1, 1]} : vector<8x128xf32> to vector<8x12xf32>
    %459 = arith.cmpf ogt, %458, %457 : vector<8x12xf32>
    %c3_i32 = arith.constant 3 : i32
    %460 = vector.broadcast %c3_i32 : i32 to vector<8x12xi32>
    %461 = arith.select %459, %460, %456 : vector<8x12xi1>, vector<8x12xi32>
    %462 = arith.select %459, %458, %457 : vector<8x12xi1>, vector<8x12xf32>
    %463 = vector.extract_strided_slice %444 {offsets = [0, 48], sizes = [8, 12], strides = [1, 1]} : vector<8x128xf32> to vector<8x12xf32>
    %464 = arith.cmpf ogt, %463, %462 : vector<8x12xf32>
    %c4_i32 = arith.constant 4 : i32
    %465 = vector.broadcast %c4_i32 : i32 to vector<8x12xi32>
    %466 = arith.select %464, %465, %461 : vector<8x12xi1>, vector<8x12xi32>
    %467 = arith.select %464, %463, %462 : vector<8x12xi1>, vector<8x12xf32>
    %468 = vector.extract_strided_slice %444 {offsets = [0, 60], sizes = [8, 12], strides = [1, 1]} : vector<8x128xf32> to vector<8x12xf32>
    %469 = arith.cmpf ogt, %468, %467 : vector<8x12xf32>
    %c5_i32 = arith.constant 5 : i32
    %470 = vector.broadcast %c5_i32 : i32 to vector<8x12xi32>
    %471 = arith.select %469, %470, %466 : vector<8x12xi1>, vector<8x12xi32>
    %c0_i32_150 = arith.constant 0 : i32
    %472 = vector.broadcast %c0_i32_150 : i32 to vector<8x116xi32>
    %473 = tpu.concatenate %471, %472 in 1 : vector<8x12xi32>, vector<8x116xi32> -> vector<8x128xi32>
    %c0_151 = arith.constant 0 : index
    %c0_152 = arith.constant 0 : index
    %474 = vector.load %arg7[%c0_151, %c0_152] : memref<8x128xi32, #tpu.memory_space<vmem>>, vector<8x128xi32>
    tpu.vector_store %arg7[%c0_151, %c0_152], %473 {strides = array<i32>} : memref<8x128xi32, #tpu.memory_space<vmem>>, vector<8x128xi32>,
    return
  }
}

</mosaic_0001>

<bundles_post_ra>
// kernel: tpu_custom_call.1
= control target key start
LH: loop header
LB: loop body
LE: loop exit
PB: predicated region body
PF: predicated region fallthrough
CT: control target
= control target key end

     0   :  { %13 = vsyncpa [#allocation5], 0  ;;  %v2666_v3 = vmov 0.0|0.0   ;;  %vm2667_vm0 = vmmov 0   ;;  %v2668_v6 = vmov 0.0   ;;  %s3236_s0 = inlined_call_operand.vmem [shape: f32[96,128], index: 0, kind: input, shape index: {}]   ;;  %s3237_s1 = inlined_call_operand.vmem [shape: f32[96,32], index: 1, kind: input, shape index: {}]   ;;  %s3238_s2 = inlined_call_operand.vmem [shape: f32[32,128], index: 2, kind: input, shape index: {}]   ;;  %s3239_s3 = inlined_call_operand.vmem [shape: f32[16,6], index: 3, kind: input, shape index: {}]   ;;  %s3240_s4 = inlined_call_operand.vmem [shape: f32[16,6], index: 4, kind: input, shape index: {}]   ;;  %s3241_s5 = inlined_call_operand.vmem [shape: f32[1,6], index: 5, kind: input, shape index: {}]   ;;  %s3242_s6 = inlined_call_operand.hbm [shape: f32[8,128], index: 6, kind: output, shape index: {0}]   ;;  %s3243_s7 = inlined_call_operand.hbm [shape: s32[8,128], index: 7, kind: output, shape index: {1}]  }
   0x1   :  { %v27_v0 = vld [vmem:[%s3238_s2] sm:$0xff]  ;;  %v28_v1 = vld [vmem:[%s3238_s2 + $0x8] sm:$0xff]  ;;  %v29_v2 = vld [vmem:[%s3238_s2 + $0x10] sm:$0xff]  ;;  %2382 = vmatprep.subr.bf16.mxu0 %v2666_v3  ;;  %2214 = vmatprep.mubr.msk.f32.mxu0 %vm2667_vm0, %v2668_v6 }
   0x2   :  { %v2738_v4 = vpack.c.bf16 %v28_v1, %v27_v0  ;;  %v30_v5 = vld [vmem:[%s3238_s2 + $0x18] sm:$0xff] }
   0x3   :  { %14 = vsyncpa [#allocation7], 0  ;;  %2388 = vmatprep.subr.bf16.mxu1 %v2666_v3  ;;  %2225 = vmatprep.mubr.msk.f32.mxu1 %vm2667_vm0, %v2668_v6  ;;  %v2749_v7 = vpack.c.bf16 %v30_v5, %v29_v2  ;;  %v31_v8 = vld [vmem:[%s3236_s0] sm:$0xff]  ;;  %s2669_s10 = smov 32   ;;  %s2670_s11 = smov 96   ;;  %vm143_vm2 = vcmask 130048  }
   0x4   :  { %2384 = vmatpush3.bf16.msra.mxu0 %v2738_v4  ;;  %2390 = vmatpush3.bf16.msra.mxu1 %v2738_v4  ;;  %v32_v23 = vld [vmem:[%s3237_s1] sm:$0xff]  ;;  %s2671_s14 = smov 64   ;;  %vm34_vm3 = vcmask 261120   ;;  %v150_v30 = vld [vmem:[%s3236_s0 + $0x8] sm:$0xff]  ;;  %v271_v54 = vld [vmem:[%s3236_s0 + $0x10] sm:$0xff]  ;;  %s2674_s21 = smov 6  }
   0x5   :  { %2385 = vmatprep.subr.bf16.mxu0 %v2666_v3  ;;  %2391 = vmatprep.subr.bf16.mxu1 %v2666_v3  ;;  %vm33_vm1 = vcmp.gt.f32.partialorder %v32_v23, 0.0  ;;  %v151_v46 = vld [vmem:[%s3237_s1 + $0x8] sm:$0xff]  ;;  %s2675_s22 = smov 24   ;;  %s2676_s23 = smov 18   ;;  %vm1971_vm15 = vcmask 48128  }
   0x6   :  { %vm152_vm4 = vcmp.gt.f32.partialorder %v151_v46, 0.0  ;;  %s2677_s24 = smov 36   ;;  %s2678_s25 = smov 30  }
   0x7   :  { %s2679_s26 = smov 48   ;;  %s2680_s27 = smov 42  }
   0x8   :  { %2387 = vmatpush3.bf16.msra.mxu0 %v2749_v7  ;;  %2393 = vmatpush3.bf16.msra.mxu1 %v2749_v7  ;;  %s2681_s28 = smov 60   ;;  %s2682_s29 = smov 54  }
   0x9   :  { %2394 = vmatprep.subr.bf16.mxu0 %v2666_v3  ;;  %2400 = vmatprep.subr.bf16.mxu1 %v2666_v3  ;;  %s2683_s30 = smov 66   ;;  %s2685_s8 = smov [#allocation4]  }
   0xa   :  { %s2048_s2 = sshll.u32 %s2685_s8, 4  ;;  %s2049_s2 = int_to_ptr.vmem [resolvable:$true] %s2048_s2 }
   0xb   :  { %2215 = vmatmul.mubr.f32.vlgmr.msra.gmra.mrb[0].mxu0 %v2668_v6  ;;  %s2618_s9 = scalar_lea.vmem %s2049_s2, 128  ;;  %p2623_p1 = scmp.lt.s32.totalorder %s2049_s2, %s2049_s2 }
   0xc   :  { %2396 = vmatpush3.bf16.msra.mxu0 %v2738_v4  ;;  %2236 = vmatprep.mubr.msk.f32.mxu0 %vm2667_vm0, %v2668_v6  ;;  %p2619_p0 = scmp.ne.s32.totalorder %s2049_s2, %s2618_s9  ;;  %p2624_p2 = scmp.lt.s32.totalorder %s2618_s9, %s2618_s9 }
   0xd   :  { %2397 = vmatprep.subr.bf16.mxu0 %v2666_v3 }
   0xe   :  { %p2625_p3 = por %p2624_p2, %p2623_p1 }
  0x10   :  { %2399 = vmatpush3.bf16.msra.mxu0 %v2749_v7  ;;  %p2626_p4 = pnand %p2625_p3, %p2619_p0 }
  0x11   :  { %2406 = vmatprep.subr.bf16.mxu0 %v2666_v3 }
  0xde   :  { %v104_v9 = vpop.f32.mrb[0].mxu0 }
  0xdf   :  { %v108_v10 = vadd.f32 %v104_v9, %v31_v8  ;;  %v2216_v11 = vpop.f32.mrb[1].mxu0 }
  0xe1   :  { %2496 = vtanh.f32 %v108_v10  ;;  %v2070_v13 = vmul.f32 -1.442695, %v108_v10  ;;  %v272_v10 = vld [vmem:[%s3237_s1 + $0x10] sm:$0xff] }
  0xe2   :  { %vm273_vm5 = vcmp.gt.f32.partialorder %v272_v10, 0.0 }
  0xe3   :  { %2498 = vpow2.f32 %v2070_v13 }
  0xeb   :  { %v2497_v12 = vpop.eup %2496 }
  0xec   :  { %118 = vrot.lane.b32.xlu0 %v2497_v12, %s2669_s10 }
  0xed   :  { %v2499_v14 = vpop.eup %2498 }
  0xee   :  { %v112_v15 = vadd.f32 1.0, %v2499_v14 }
  0xf0   :  { %2500 = vrcp.f32 %v112_v15 }
  0xfa   :  { %v2501_v16 = vpop.eup %2500 }
  0xfb   :  { %v116_v19 = vmul.f32 0.0, %v2501_v16 }
 0x15e   :  { %v119_v17 = vpop.permute.xlu0 %118 }
 0x15f   :  { %v121_v18 = vmul.f32 %v2501_v16, %v119_v17 }
 0x161   :  { %123 = vrot.lane.b32.xlu0 %v121_v18, %s2669_s10  ;;  %v393_v18 = vld [vmem:[%s3236_s0 + $0x18] sm:$0xff] }
 0x1d3   :  { %v124_v20 = vpop.permute.xlu0 %123 }
 0x1d4   :  { %v126_v21 = vadd.f32 %v124_v20, %v116_v19 }
 0x1d6   :  { %2502 = vtanh.f32 %v126_v21  ;;  %139 = vrot.lane.b32.xlu0 %v126_v21, %s2670_s11 }
 0x1e0   :  { %v2503_v22 = vpop.eup %2502 }
 0x1e1   :  { %129 = vrot.lane.b32.xlu1 %v2503_v22, %s2669_s10 }
 0x248   :  { %v140_v24 = vpop.permute.xlu0 %139 }
 0x249   :  { %v142_v25 = vsel %vm33_vm1, %v140_v24, 0.0 }
 0x24a   :  { %234 = vrot.lane.b32.xlu0 %v142_v25, %s2669_s10 }
 0x253   :  { %v130_v26 = vpop.permute.xlu1 %129 }
 0x254   :  { %v132_v27 = vmul.f32 %v2501_v16, %v130_v26 }
 0x256   :  { %134 = vrot.lane.b32.xlu1 %v132_v27, %s2671_s14 }
 0x2bc   :  { %v235_v41 = vpop.permute.xlu0 %234 }
 0x2c8   :  { %v135_v28 = vpop.permute.xlu1 %134 }
 0x2c9   :  { %v2777_v29 = vsel %vm33_vm1, %v135_v28, 0.0  ;;  %vm1975_vm1 = vcmask 146432  }
 0x2ca   :  { %144 = vst.msk [vmem:[#allocation2] sm:$0xff] %vm143_vm2, %v2777_v29  ;;  %2226 = vmatmul.mubr.msk.f32.vlgmr.msra.gmra.mrb[0].mxu1 %vm34_vm3, %v2777_v29 }
 0x2cb   :  { %2402 = vmatpush3.bf16.msra.mxu1 %v2738_v4  ;;  %2247 = vmatprep.mubr.msk.f32.mxu1 %vm2667_vm0, %v2668_v6 }
 0x2cc   :  { %2403 = vmatprep.subr.bf16.mxu1 %v2666_v3 }
 0x2cf   :  { %2405 = vmatpush3.bf16.msra.mxu1 %v2749_v7 }
 0x2d0   :  { %2412 = vmatprep.subr.bf16.mxu1 %v2666_v3 }
 0x39d   :  { %v221_v31 = vpop.f32.mrb[0].mxu1 }
 0x39e   :  { %v225_v32 = vadd.f32 %v221_v31, %v150_v30  ;;  %v2227_v33 = vpop.f32.mrb[1].mxu1 }
 0x3a0   :  { %2504 = vtanh.f32 %v225_v32  ;;  %v2072_v35 = vmul.f32 -1.442695, %v225_v32 }
 0x3a2   :  { %2506 = vpow2.f32 %v2072_v35  ;;  %v394_v35 = vld [vmem:[%s3237_s1 + $0x18] sm:$0xff] }
 0x3a3   :  { %vm395_vm6 = vcmp.gt.f32.partialorder %v394_v35, 0.0 }
 0x3aa   :  { %v2505_v34 = vpop.eup %2504 }
 0x3ab   :  { %239 = vrot.lane.b32.xlu1 %v2505_v34, %s2669_s10 }
 0x3ac   :  { %v2507_v36 = vpop.eup %2506 }
 0x3ad   :  { %v229_v37 = vadd.f32 1.0, %v2507_v36 }
 0x3af   :  { %2508 = vrcp.f32 %v229_v37 }
 0x3b9   :  { %v2509_v38 = vpop.eup %2508 }
 0x3ba   :  { %v237_v42 = vmul.f32 %v2509_v38, %v235_v41 }
 0x41d   :  { %v240_v39 = vpop.permute.xlu1 %239 }
 0x41e   :  { %v242_v40 = vmul.f32 %v2509_v38, %v240_v39 }
 0x420   :  { %244 = vrot.lane.b32.xlu1 %v242_v40, %s2669_s10 }
 0x492   :  { %v245_v43 = vpop.permute.xlu1 %244 }
 0x493   :  { %v247_v44 = vadd.f32 %v245_v43, %v237_v42  ;;  %v515_v43 = vld [vmem:[%s3236_s0 + $0x20] sm:$0xff] }
 0x495   :  { %2510 = vtanh.f32 %v247_v44 }
 0x49f   :  { %v2511_v45 = vpop.eup %2510 }
 0x4a0   :  { %250 = vrot.lane.b32.xlu0 %v2511_v45, %s2669_s10 }
 0x4a4   :  { %260 = vrot.lane.b32.xlu0 %v247_v44, %s2670_s11 }
 0x512   :  { %v251_v47 = vpop.permute.xlu0 %250 }
 0x513   :  { %v253_v48 = vmul.f32 %v2509_v38, %v251_v47 }
 0x515   :  { %255 = vrot.lane.b32.xlu1 %v253_v48, %s2671_s14 }
 0x516   :  { %v261_v49 = vpop.permute.xlu0 %260 }
 0x517   :  { %v263_v50 = vsel %vm152_vm4, %v261_v49, %v142_v25 }
 0x518   :  { %356 = vrot.lane.b32.xlu0 %v263_v50, %s2669_s10 }
 0x587   :  { %v256_v51 = vpop.permute.xlu1 %255 }
 0x588   :  { %v258_v52 = vsel %vm152_vm4, %v256_v51, %v2777_v29  ;;  %v2802_v53 = vsel %vm152_vm4, %v256_v51, 0.0  ;;  %vm1981_vm4 = vcmask 293888  }
 0x589   :  { %265 = vst.msk [vmem:[#allocation2 + $0x8] sm:$0xff] %vm143_vm2, %v2802_v53  ;;  %2237 = vmatmul.mubr.msk.f32.vlgmr.msra.gmra.mrb[2].mxu0 %vm34_vm3, %v258_v52 }
 0x58a   :  { %2408 = vmatpush3.bf16.msra.mxu0 %v2738_v4  ;;  %2258 = vmatprep.mubr.msk.f32.mxu0 %vm2667_vm0, %v2668_v6  ;;  %v357_v1 = vpop.permute.xlu0 %356 }
 0x58b   :  { %2409 = vmatprep.subr.bf16.mxu0 %v2666_v3 }
 0x58e   :  { %2411 = vmatpush3.bf16.msra.mxu0 %v2749_v7 }
 0x58f   :  { %2418 = vmatprep.subr.bf16.mxu0 %v2666_v3 }
 0x65c   :  { %v343_v55 = vpop.f32.mrb[2].mxu0 }
 0x65d   :  { %v347_v56 = vadd.f32 %v343_v55, %v271_v54  ;;  %v2238_v57 = vpop.f32.mrb[3].mxu0 }
 0x65f   :  { %2512 = vtanh.f32 %v347_v56  ;;  %v2074_v59 = vmul.f32 -1.442695, %v347_v56 }
 0x661   :  { %2514 = vpow2.f32 %v2074_v59 }
 0x669   :  { %v2513_v58 = vpop.eup %2512 }
 0x66a   :  { %361 = vrot.lane.b32.xlu1 %v2513_v58, %s2669_s10 }
 0x66b   :  { %v2515_v60 = vpop.eup %2514 }
 0x66c   :  { %v351_v61 = vadd.f32 1.0, %v2515_v60  ;;  %v516_v60 = vld [vmem:[%s3237_s1 + $0x20] sm:$0xff] }
 0x66d   :  { %vm517_vm7 = vcmp.gt.f32.partialorder %v516_v60, 0.0  ;;  %v881_v60 = vld [vmem:[%s3236_s0 + $0x38] sm:$0xff] }
 0x66e   :  { %2516 = vrcp.f32 %v351_v61 }
 0x678   :  { %v2517_v62 = vpop.eup %2516 }
 0x679   :  { %v359_v2 = vmul.f32 %v2517_v62, %v357_v1 }
 0x6dc   :  { %v362_v63 = vpop.permute.xlu1 %361 }
 0x6dd   :  { %v364_v0 = vmul.f32 %v2517_v62, %v362_v63 }
 0x6df   :  { %366 = vrot.lane.b32.xlu1 %v364_v0, %s2669_s10 }
 0x751   :  { %v367_v5 = vpop.permute.xlu1 %366 }
 0x752   :  { %v369_v8 = vadd.f32 %v367_v5, %v359_v2 }
 0x754   :  { %2518 = vtanh.f32 %v369_v8 }
 0x75e   :  { %v2519_v9 = vpop.eup %2518 }
 0x75f   :  { %372 = vrot.lane.b32.xlu0 %v2519_v9, %s2669_s10 }
 0x763   :  { %382 = vrot.lane.b32.xlu0 %v369_v8, %s2670_s11  ;;  %v637_v8 = vld [vmem:[%s3236_s0 + $0x28] sm:$0xff] }
 0x7d1   :  { %v373_v11 = vpop.permute.xlu0 %372 }
 0x7d2   :  { %v375_v12 = vmul.f32 %v2517_v62, %v373_v11 }
 0x7d4   :  { %377 = vrot.lane.b32.xlu1 %v375_v12, %s2671_s14 }
 0x7d5   :  { %v383_v13 = vpop.permute.xlu0 %382 }
 0x7d6   :  { %v385_v14 = vsel %vm273_vm5, %v383_v13, %v263_v50 }
 0x7d7   :  { %478 = vrot.lane.b32.xlu0 %v385_v14, %s2669_s10 }
 0x846   :  { %v378_v15 = vpop.permute.xlu1 %377 }
 0x847   :  { %v380_v16 = vsel %vm273_vm5, %v378_v15, %v258_v52  ;;  %v2825_v17 = vsel %vm273_vm5, %v378_v15, 0.0  ;;  %vm1983_vm5 = vcmask 343040  }
 0x848   :  { %387 = vst.msk [vmem:[#allocation2 + $0x10] sm:$0xff] %vm143_vm2, %v2825_v17  ;;  %2248 = vmatmul.mubr.msk.f32.vlgmr.msra.gmra.mrb[2].mxu1 %vm34_vm3, %v380_v16 }
 0x849   :  { %2414 = vmatpush3.bf16.msra.mxu1 %v2738_v4  ;;  %2269 = vmatprep.mubr.msk.f32.mxu1 %vm2667_vm0, %v2668_v6  ;;  %v479_v30 = vpop.permute.xlu0 %478 }
 0x84a   :  { %2415 = vmatprep.subr.bf16.mxu1 %v2666_v3 }
 0x84d   :  { %2417 = vmatpush3.bf16.msra.mxu1 %v2749_v7 }
 0x84e   :  { %2424 = vmatprep.subr.bf16.mxu1 %v2666_v3 }
 0x91b   :  { %v465_v19 = vpop.f32.mrb[2].mxu1 }
 0x91c   :  { %v469_v20 = vadd.f32 %v465_v19, %v393_v18  ;;  %v2249_v21 = vpop.f32.mrb[3].mxu1 }
 0x91e   :  { %2520 = vtanh.f32 %v469_v20  ;;  %v2076_v23 = vmul.f32 -1.442695, %v469_v20 }
 0x920   :  { %2522 = vpow2.f32 %v2076_v23 }
 0x928   :  { %v2521_v22 = vpop.eup %2520 }
 0x929   :  { %483 = vrot.lane.b32.xlu1 %v2521_v22, %s2669_s10 }
 0x92a   :  { %v2523_v24 = vpop.eup %2522 }
 0x92b   :  { %v473_v25 = vadd.f32 1.0, %v2523_v24 }
 0x92d   :  { %2524 = vrcp.f32 %v473_v25  ;;  %v638_v25 = vld [vmem:[%s3237_s1 + $0x28] sm:$0xff] }
 0x92e   :  { %vm639_vm8 = vcmp.gt.f32.partialorder %v638_v25, 0.0 }
 0x937   :  { %v2525_v26 = vpop.eup %2524 }
 0x938   :  { %v481_v31 = vmul.f32 %v2525_v26, %v479_v30 }
 0x99b   :  { %v484_v27 = vpop.permute.xlu1 %483 }
 0x99c   :  { %v486_v28 = vmul.f32 %v2525_v26, %v484_v27 }
 0x99e   :  { %488 = vrot.lane.b32.xlu1 %v486_v28, %s2669_s10 }
 0xa10   :  { %v489_v32 = vpop.permute.xlu1 %488 }
 0xa11   :  { %v491_v33 = vadd.f32 %v489_v32, %v481_v31 }
 0xa13   :  { %2526 = vtanh.f32 %v491_v33 }
 0xa1d   :  { %v2527_v34 = vpop.eup %2526 }
 0xa1e   :  { %494 = vrot.lane.b32.xlu0 %v2527_v34, %s2669_s10  ;;  %v759_v34 = vld [vmem:[%s3236_s0 + $0x30] sm:$0xff] }
 0xa22   :  { %504 = vrot.lane.b32.xlu0 %v491_v33, %s2670_s11 }
 0xa90   :  { %v495_v36 = vpop.permute.xlu0 %494 }
 0xa91   :  { %v497_v37 = vmul.f32 %v2525_v26, %v495_v36 }
 0xa93   :  { %499 = vrot.lane.b32.xlu1 %v497_v37, %s2671_s14 }
 0xa94   :  { %v505_v38 = vpop.permute.xlu0 %504 }
 0xa95   :  { %v507_v39 = vsel %vm395_vm6, %v505_v38, %v385_v14 }
 0xa96   :  { %600 = vrot.lane.b32.xlu0 %v507_v39, %s2669_s10 }
 0xb05   :  { %v500_v40 = vpop.permute.xlu1 %499 }
 0xb06   :  { %v502_v41 = vsel %vm395_vm6, %v500_v40, %v380_v16  ;;  %v2848_v42 = vsel %vm395_vm6, %v500_v40, 0.0  ;;  %vm1985_vm6 = vcmask 392192  }
 0xb07   :  { %509 = vst.msk [vmem:[#allocation2 + $0x18] sm:$0xff] %vm143_vm2, %v2848_v42  ;;  %2259 = vmatmul.mubr.msk.f32.vlgmr.msra.gmra.mrb[4].mxu0 %vm34_vm3, %v502_v41 }
 0xb08   :  { %2420 = vmatpush3.bf16.msra.mxu0 %v2738_v4  ;;  %2280 = vmatprep.mubr.msk.f32.mxu0 %vm2667_vm0, %v2668_v6  ;;  %v601_v55 = vpop.permute.xlu0 %600 }
 0xb09   :  { %2421 = vmatprep.subr.bf16.mxu0 %v2666_v3 }
 0xb0c   :  { %2423 = vmatpush3.bf16.msra.mxu0 %v2749_v7 }
 0xb0d   :  { %2430 = vmatprep.subr.bf16.mxu0 %v2666_v3 }
 0xbda   :  { %v587_v44 = vpop.f32.mrb[4].mxu0 }
 0xbdb   :  { %v591_v45 = vadd.f32 %v587_v44, %v515_v43  ;;  %v2260_v46 = vpop.f32.mrb[5].mxu0 }
 0xbdd   :  { %2528 = vtanh.f32 %v591_v45  ;;  %v2078_v48 = vmul.f32 -1.442695, %v591_v45 }
 0xbdf   :  { %2530 = vpow2.f32 %v2078_v48 }
 0xbe7   :  { %v2529_v47 = vpop.eup %2528 }
 0xbe8   :  { %605 = vrot.lane.b32.xlu1 %v2529_v47, %s2669_s10 }
 0xbe9   :  { %v2531_v49 = vpop.eup %2530 }
 0xbea   :  { %v595_v50 = vadd.f32 1.0, %v2531_v49 }
 0xbec   :  { %2532 = vrcp.f32 %v595_v50 }
 0xbf6   :  { %v2533_v51 = vpop.eup %2532 }
 0xbf7   :  { %v603_v56 = vmul.f32 %v2533_v51, %v601_v55 }
 0xc5a   :  { %v606_v52 = vpop.permute.xlu1 %605 }
 0xc5b   :  { %v608_v54 = vmul.f32 %v2533_v51, %v606_v52 }
 0xc5d   :  { %610 = vrot.lane.b32.xlu1 %v608_v54, %s2669_s10 }
 0xccf   :  { %v611_v57 = vpop.permute.xlu1 %610 }
 0xcd0   :  { %v613_v58 = vadd.f32 %v611_v57, %v603_v56 }
 0xcd2   :  { %2534 = vtanh.f32 %v613_v58 }
 0xcdc   :  { %v2535_v59 = vpop.eup %2534 }
 0xcdd   :  { %616 = vrot.lane.b32.xlu0 %v2535_v59, %s2669_s10 }
 0xce1   :  { %626 = vrot.lane.b32.xlu0 %v613_v58, %s2670_s11 }
 0xd4f   :  { %v617_v61 = vpop.permute.xlu0 %616 }
 0xd50   :  { %v619_v62 = vmul.f32 %v2533_v51, %v617_v61  ;;  %v760_v51 = vld [vmem:[%s3237_s1 + $0x30] sm:$0xff] }
 0xd51   :  { %vm761_vm9 = vcmp.gt.f32.partialorder %v760_v51, 0.0 }
 0xd52   :  { %621 = vrot.lane.b32.xlu1 %v619_v62, %s2671_s14 }
 0xd53   :  { %v627_v63 = vpop.permute.xlu0 %626 }
 0xd54   :  { %v629_v0 = vsel %vm517_vm7, %v627_v63, %v507_v39 }
 0xd55   :  { %722 = vrot.lane.b32.xlu0 %v629_v0, %s2669_s10 }
 0xdc4   :  { %v622_v1 = vpop.permute.xlu1 %621 }
 0xdc5   :  { %v624_v2 = vsel %vm517_vm7, %v622_v1, %v502_v41  ;;  %v2871_v5 = vsel %vm517_vm7, %v622_v1, 0.0  ;;  %vm1987_vm7 = vcmask 441344  }
 0xdc6   :  { %631 = vst.msk [vmem:[#allocation2 + $0x20] sm:$0xff] %vm143_vm2, %v2871_v5  ;;  %2270 = vmatmul.mubr.msk.f32.vlgmr.msra.gmra.mrb[4].mxu1 %vm34_vm3, %v624_v2 }
 0xdc7   :  { %2426 = vmatpush3.bf16.msra.mxu1 %v2738_v4  ;;  %2291 = vmatprep.mubr.msk.f32.mxu1 %vm2667_vm0, %v2668_v6  ;;  %v723_v20 = vpop.permute.xlu0 %722 }
 0xdc8   :  { %2427 = vmatprep.subr.bf16.mxu1 %v2666_v3 }
 0xdcb   :  { %2429 = vmatpush3.bf16.msra.mxu1 %v2749_v7 }
 0xdcc   :  { %2436 = vmatprep.subr.bf16.mxu1 %v2666_v3 }
 0xe99   :  { %v709_v9 = vpop.f32.mrb[4].mxu1 }
 0xe9a   :  { %v713_v10 = vadd.f32 %v709_v9, %v637_v8  ;;  %v2271_v11 = vpop.f32.mrb[5].mxu1 }
 0xe9c   :  { %2536 = vtanh.f32 %v713_v10  ;;  %v2080_v13 = vmul.f32 -1.442695, %v713_v10 }
 0xe9e   :  { %2538 = vpow2.f32 %v2080_v13 }
 0xea6   :  { %v2537_v12 = vpop.eup %2536 }
 0xea7   :  { %727 = vrot.lane.b32.xlu1 %v2537_v12, %s2669_s10 }
 0xea8   :  { %v2539_v14 = vpop.eup %2538 }
 0xea9   :  { %v717_v15 = vadd.f32 1.0, %v2539_v14 }
 0xeab   :  { %2540 = vrcp.f32 %v717_v15 }
 0xeb5   :  { %v2541_v16 = vpop.eup %2540 }
 0xeb6   :  { %v725_v21 = vmul.f32 %v2541_v16, %v723_v20 }
 0xf19   :  { %v728_v18 = vpop.permute.xlu1 %727 }
 0xf1a   :  { %v730_v19 = vmul.f32 %v2541_v16, %v728_v18  ;;  %v882_v18 = vld [vmem:[%s3237_s1 + $0x38] sm:$0xff] }
 0xf1b   :  { %vm883_vm10 = vcmp.gt.f32.partialorder %v882_v18, 0.0 }
 0xf1c   :  { %732 = vrot.lane.b32.xlu1 %v730_v19, %s2669_s10 }
 0xf8e   :  { %v733_v22 = vpop.permute.xlu1 %732 }
 0xf8f   :  { %v735_v23 = vadd.f32 %v733_v22, %v725_v21 }
 0xf91   :  { %2542 = vtanh.f32 %v735_v23 }
 0xf9b   :  { %v2543_v24 = vpop.eup %2542 }
 0xf9c   :  { %738 = vrot.lane.b32.xlu0 %v2543_v24, %s2669_s10 }
 0xfa0   :  { %748 = vrot.lane.b32.xlu0 %v735_v23, %s2670_s11 }
0x100e   :  { %v739_v26 = vpop.permute.xlu0 %738 }
0x100f   :  { %v741_v27 = vmul.f32 %v2541_v16, %v739_v26  ;;  %v1003_v26 = vld [vmem:[%s3236_s0 + $0x40] sm:$0xff] }
0x1011   :  { %743 = vrot.lane.b32.xlu1 %v741_v27, %s2671_s14 }
0x1012   :  { %v749_v28 = vpop.permute.xlu0 %748 }
0x1013   :  { %v751_v30 = vsel %vm639_vm8, %v749_v28, %v629_v0 }
0x1014   :  { %844 = vrot.lane.b32.xlu0 %v751_v30, %s2669_s10 }
0x1083   :  { %v744_v31 = vpop.permute.xlu1 %743 }
0x1084   :  { %v746_v32 = vsel %vm639_vm8, %v744_v31, %v624_v2  ;;  %v2894_v33 = vsel %vm639_vm8, %v744_v31, 0.0  ;;  %vm1989_vm8 = vcmask 490496  }
0x1085   :  { %753 = vst.msk [vmem:[#allocation2 + $0x28] sm:$0xff] %vm143_vm2, %v2894_v33  ;;  %2281 = vmatmul.mubr.msk.f32.vlgmr.msra.gmra.mrb[6].mxu0 %vm34_vm3, %v746_v32 }
0x1086   :  { %2432 = vmatpush3.bf16.msra.mxu0 %v2738_v4  ;;  %2302 = vmatprep.mubr.msk.f32.mxu0 %vm2667_vm0, %v2668_v6  ;;  %v845_v46 = vpop.permute.xlu0 %844 }
0x1087   :  { %2433 = vmatprep.subr.bf16.mxu0 %v2666_v3 }
0x108a   :  { %2435 = vmatpush3.bf16.msra.mxu0 %v2749_v7 }
0x108b   :  { %2442 = vmatprep.subr.bf16.mxu0 %v2666_v3 }
0x1158   :  { %v831_v35 = vpop.f32.mrb[6].mxu0 }
0x1159   :  { %v835_v36 = vadd.f32 %v831_v35, %v759_v34  ;;  %v2282_v37 = vpop.f32.mrb[7].mxu0 }
0x115b   :  { %2544 = vtanh.f32 %v835_v36  ;;  %v2082_v39 = vmul.f32 -1.442695, %v835_v36 }
0x115d   :  { %2546 = vpow2.f32 %v2082_v39 }
0x1165   :  { %v2545_v38 = vpop.eup %2544 }
0x1166   :  { %849 = vrot.lane.b32.xlu1 %v2545_v38, %s2669_s10 }
0x1167   :  { %v2547_v40 = vpop.eup %2546 }
0x1168   :  { %v839_v41 = vadd.f32 1.0, %v2547_v40 }
0x116a   :  { %2548 = vrcp.f32 %v839_v41 }
0x1174   :  { %v2549_v43 = vpop.eup %2548 }
0x1175   :  { %v847_v47 = vmul.f32 %v2549_v43, %v845_v46 }
0x11d8   :  { %v850_v44 = vpop.permute.xlu1 %849 }
0x11d9   :  { %v852_v45 = vmul.f32 %v2549_v43, %v850_v44 }
0x11db   :  { %854 = vrot.lane.b32.xlu1 %v852_v45, %s2669_s10  ;;  %v1004_v45 = vld [vmem:[%s3237_s1 + $0x40] sm:$0xff] }
0x11dc   :  { %vm1005_vm11 = vcmp.gt.f32.partialorder %v1004_v45, 0.0 }
0x124d   :  { %v855_v48 = vpop.permute.xlu1 %854 }
0x124e   :  { %v857_v49 = vadd.f32 %v855_v48, %v847_v47 }
0x1250   :  { %2550 = vtanh.f32 %v857_v49 }
0x125a   :  { %v2551_v50 = vpop.eup %2550 }
0x125b   :  { %860 = vrot.lane.b32.xlu0 %v2551_v50, %s2669_s10 }
0x125f   :  { %870 = vrot.lane.b32.xlu0 %v857_v49, %s2670_s11 }
0x12cd   :  { %v861_v52 = vpop.permute.xlu0 %860 }
0x12ce   :  { %v863_v54 = vmul.f32 %v2549_v43, %v861_v52 }
0x12d0   :  { %865 = vrot.lane.b32.xlu1 %v863_v54, %s2671_s14  ;;  %v1125_v54 = vld [vmem:[%s3236_s0 + $0x48] sm:$0xff] }
0x12d1   :  { %v871_v55 = vpop.permute.xlu0 %870 }
0x12d2   :  { %v873_v56 = vsel %vm761_vm9, %v871_v55, %v751_v30 }
0x12d3   :  { %966 = vrot.lane.b32.xlu0 %v873_v56, %s2669_s10 }
0x1342   :  { %v866_v57 = vpop.permute.xlu1 %865 }
0x1343   :  { %v868_v58 = vsel %vm761_vm9, %v866_v57, %v746_v32  ;;  %v2917_v59 = vsel %vm761_vm9, %v866_v57, 0.0  ;;  %vm1991_vm9 = vcmask 539648  }
0x1344   :  { %875 = vst.msk [vmem:[#allocation2 + $0x30] sm:$0xff] %vm143_vm2, %v2917_v59  ;;  %2292 = vmatmul.mubr.msk.f32.vlgmr.msra.gmra.mrb[6].mxu1 %vm34_vm3, %v868_v58 }
0x1345   :  { %2438 = vmatpush3.bf16.msra.mxu1 %v2738_v4  ;;  %2313 = vmatprep.mubr.msk.f32.mxu1 %vm2667_vm0, %v2668_v6  ;;  %v967_v12 = vpop.permute.xlu0 %966 }
0x1346   :  { %2439 = vmatprep.subr.bf16.mxu1 %v2666_v3 }
0x1349   :  { %2441 = vmatpush3.bf16.msra.mxu1 %v2749_v7 }
0x134a   :  { %2448 = vmatprep.subr.bf16.mxu1 %v2666_v3 }
0x1417   :  { %v953_v61 = vpop.f32.mrb[6].mxu1 }
0x1418   :  { %v957_v62 = vadd.f32 %v953_v61, %v881_v60  ;;  %v2293_v63 = vpop.f32.mrb[7].mxu1 }
0x141a   :  { %2552 = vtanh.f32 %v957_v62  ;;  %v2084_v1 = vmul.f32 -1.442695, %v957_v62 }
0x141c   :  { %2554 = vpow2.f32 %v2084_v1 }
0x1424   :  { %v2553_v0 = vpop.eup %2552 }
0x1425   :  { %971 = vrot.lane.b32.xlu1 %v2553_v0, %s2669_s10 }
0x1426   :  { %v2555_v2 = vpop.eup %2554 }
0x1427   :  { %v961_v8 = vadd.f32 1.0, %v2555_v2 }
0x1429   :  { %2556 = vrcp.f32 %v961_v8  ;;  %v1497_v8 = vld [vmem:[%s3239_s3] sm:$0xff] }
0x1433   :  { %v2557_v9 = vpop.eup %2556 }
0x1434   :  { %v969_v13 = vmul.f32 %v2557_v9, %v967_v12 }
0x1497   :  { %v972_v10 = vpop.permute.xlu1 %971 }
0x1498   :  { %v974_v11 = vmul.f32 %v2557_v9, %v972_v10 }
0x149a   :  { %976 = vrot.lane.b32.xlu1 %v974_v11, %s2669_s10  ;;  %v1126_v11 = vld [vmem:[%s3237_s1 + $0x48] sm:$0xff] }
0x149b   :  { %vm1127_vm12 = vcmp.gt.f32.partialorder %v1126_v11, 0.0 }
0x150c   :  { %v977_v14 = vpop.permute.xlu1 %976 }
0x150d   :  { %v979_v15 = vadd.f32 %v977_v14, %v969_v13 }
0x150f   :  { %2558 = vtanh.f32 %v979_v15 }
0x1519   :  { %v2559_v16 = vpop.eup %2558 }
0x151a   :  { %982 = vrot.lane.b32.xlu0 %v2559_v16, %s2669_s10 }
0x151e   :  { %992 = vrot.lane.b32.xlu0 %v979_v15, %s2670_s11 }
0x158c   :  { %v983_v19 = vpop.permute.xlu0 %982 }
0x158d   :  { %v985_v20 = vmul.f32 %v2557_v9, %v983_v19  ;;  %v1498_v9 = vld [vmem:[%s3239_s3 + $0x8] sm:$0xff] }
0x158e   :  { %v2458_v10 = vpack.c.bf16 %v1498_v9, %v1497_v8  ;;  %v1369_v9 = vld [vmem:[%s3236_s0 + $0x58] sm:$0xff] }
0x158f   :  { %987 = vrot.lane.b32.xlu1 %v985_v20, %s2671_s14  ;;  %v1485_v20 = vld [vmem:[#allocation2] sm:$0xff] }
0x1590   :  { %v993_v21 = vpop.permute.xlu0 %992 }
0x1591   :  { %v995_v22 = vsel %vm883_vm10, %v993_v21, %v873_v56  ;;  %v1486_v21 = vld [vmem:[#allocation2 + $0x8] sm:$0xff] }
0x1592   :  { %1088 = vrot.lane.b32.xlu0 %v995_v22, %s2669_s10 }
0x1601   :  { %v988_v23 = vpop.permute.xlu1 %987 }
0x1602   :  { %v990_v24 = vsel %vm883_vm10, %v988_v23, %v868_v58  ;;  %v2940_v25 = vsel %vm883_vm10, %v988_v23, 0.0  ;;  %v1488_v23 = vld [vmem:[#allocation2 + $0x18] sm:$0xff]  ;;  %vm1993_vm10 = vcmask 588800  }
0x1603   :  { %997 = vst.msk [vmem:[#allocation2 + $0x38] sm:$0xff] %vm143_vm2, %v2940_v25  ;;  %2303 = vmatmul.mubr.msk.f32.vlgmr.msra.gmra.mrb[8].mxu0 %vm34_vm3, %v990_v24 }
0x1604   :  { %2444 = vmatpush3.bf16.msra.mxu0 %v2738_v4  ;;  %2324 = vmatprep.mubr.msk.f32.mxu0 %vm2667_vm0, %v2668_v6  ;;  %v1089_v39 = vpop.permute.xlu0 %1088 }
0x1605   :  { %2445 = vmatprep.subr.bf16.mxu0 %v2666_v3 }
0x1608   :  { %2447 = vmatpush3.bf16.msra.mxu0 %v2749_v7 }
0x1609   :  { %2459 = vmatprep.subr.bf16.mxu0 %v2458_v10 }
0x16d6   :  { %v1075_v27 = vpop.f32.mrb[8].mxu0 }
0x16d7   :  { %v1079_v28 = vadd.f32 %v1075_v27, %v1003_v26  ;;  %v2304_v30 = vpop.f32.mrb[9].mxu0  ;;  %v1490_v26 = vld [vmem:[#allocation2 + $0x28] sm:$0xff]  ;;  %v1491_v27 = vld [vmem:[#allocation2 + $0x30] sm:$0xff] }
0x16d9   :  { %2560 = vtanh.f32 %v1079_v28  ;;  %v2086_v32 = vmul.f32 -1.442695, %v1079_v28  ;;  %v1492_v28 = vld [vmem:[#allocation2 + $0x38] sm:$0xff] }
0x16db   :  { %2562 = vpow2.f32 %v2086_v32  ;;  %v1247_v32 = vld [vmem:[%s3236_s0 + $0x50] sm:$0xff]  ;;  %s2672_s0 = smov 112  }
0x16e3   :  { %v2561_v31 = vpop.eup %2560 }
0x16e4   :  { %1093 = vrot.lane.b32.xlu1 %v2561_v31, %s2669_s10 }
0x16e5   :  { %v2563_v34 = vpop.eup %2562 }
0x16e6   :  { %v1083_v35 = vadd.f32 1.0, %v2563_v34 }
0x16e8   :  { %2564 = vrcp.f32 %v1083_v35 }
0x16f2   :  { %v2565_v36 = vpop.eup %2564 }
0x16f3   :  { %v1091_v40 = vmul.f32 %v2565_v36, %v1089_v39 }
0x1756   :  { %v1094_v37 = vpop.permute.xlu1 %1093 }
0x1757   :  { %v1096_v38 = vmul.f32 %v2565_v36, %v1094_v37 }
0x1759   :  { %1098 = vrot.lane.b32.xlu1 %v1096_v38, %s2669_s10 }
0x17cb   :  { %v1099_v41 = vpop.permute.xlu1 %1098 }
0x17cc   :  { %v1101_v43 = vadd.f32 %v1099_v41, %v1091_v40 }
0x17ce   :  { %2566 = vtanh.f32 %v1101_v43 }
0x17d8   :  { %v2567_v44 = vpop.eup %2566 }
0x17d9   :  { %1104 = vrot.lane.b32.xlu0 %v2567_v44, %s2669_s10 }
0x17dd   :  { %1114 = vrot.lane.b32.xlu0 %v1101_v43, %s2670_s11 }
0x184b   :  { %v1105_v46 = vpop.permute.xlu0 %1104 }
0x184c   :  { %v1107_v47 = vmul.f32 %v2565_v36, %v1105_v46 }
0x184e   :  { %1109 = vrot.lane.b32.xlu1 %v1107_v47, %s2671_s14 }
0x184f   :  { %v1115_v48 = vpop.permute.xlu0 %1114 }
0x1850   :  { %v1117_v49 = vsel %vm1005_vm11, %v1115_v48, %v995_v22  ;;  %v1487_v22 = vld [vmem:[#allocation2 + $0x10] sm:$0xff] }
0x1851   :  { %1210 = vrot.lane.b32.xlu0 %v1117_v49, %s2669_s10 }
0x18c0   :  { %v1110_v50 = vpop.permute.xlu1 %1109 }
0x18c1   :  { %v1112_v51 = vsel %vm1005_vm11, %v1110_v50, %v990_v24  ;;  %v2962_v52 = vsel %vm1005_vm11, %v1110_v50, 0.0  ;;  %v1489_v24 = vld [vmem:[#allocation2 + $0x20] sm:$0xff] }
0x18c2   :  { %1119 = vst.msk [vmem:[#allocation2 + $0x40] sm:$0xff] %vm143_vm2, %v2962_v52  ;;  %2314 = vmatmul.mubr.msk.f32.vlgmr.msra.gmra.mrb[8].mxu1 %vm34_vm3, %v1112_v51 }
0x18c3   :  { %2450 = vmatpush3.bf16.msra.mxu1 %v2738_v4  ;;  %2335 = vmatprep.mubr.msk.f32.mxu1 %vm2667_vm0, %v2668_v6  ;;  %vm1973_vm0 = vcmask 97280  }
0x18c4   :  { %2451 = vmatprep.subr.bf16.mxu1 %v2666_v3 }
0x18c7   :  { %2453 = vmatpush3.bf16.msra.mxu1 %v2749_v7  ;;  %v1211_v7 = vpop.permute.xlu0 %1210 }
0x18c9   :  { %v1493_v30 = vld [vmem:[#allocation2 + $0x40] sm:$0xff] }
0x1995   :  { %v1197_v55 = vpop.f32.mrb[8].mxu1 }
0x1996   :  { %v1201_v56 = vadd.f32 %v1197_v55, %v1125_v54  ;;  %v2315_v57 = vpop.f32.mrb[9].mxu1 }
0x1998   :  { %2568 = vtanh.f32 %v1201_v56  ;;  %v2088_v60 = vmul.f32 -1.442695, %v1201_v56 }
0x199a   :  { %2570 = vpow2.f32 %v2088_v60 }
0x19a2   :  { %v2569_v58 = vpop.eup %2568 }
0x19a3   :  { %1215 = vrot.lane.b32.xlu1 %v2569_v58, %s2669_s10 }
0x19a4   :  { %v2571_v4 = vpop.eup %2570 }
0x19a5   :  { %v1205_v61 = vadd.f32 1.0, %v2571_v4 }
0x19a7   :  { %2572 = vrcp.f32 %v1205_v61 }
0x19b1   :  { %v2573_v6 = vpop.eup %2572 }
0x19b2   :  { %v1213_v63 = vmul.f32 %v2573_v6, %v1211_v7 }
0x1a15   :  { %v1216_v3 = vpop.permute.xlu1 %1215 }
0x1a16   :  { %v1218_v62 = vmul.f32 %v2573_v6, %v1216_v3 }
0x1a18   :  { %1220 = vrot.lane.b32.xlu1 %v1218_v62, %s2669_s10 }
0x1a8a   :  { %v1221_v0 = vpop.permute.xlu1 %1220 }
0x1a8b   :  { %v1223_v1 = vadd.f32 %v1221_v0, %v1213_v63 }
0x1a8d   :  { %2574 = vtanh.f32 %v1223_v1 }
0x1a97   :  { %v2575_v2 = vpop.eup %2574 }
0x1a98   :  { %1226 = vrot.lane.b32.xlu0 %v2575_v2, %s2669_s10 }
0x1a9c   :  { %1236 = vrot.lane.b32.xlu0 %v1223_v1, %s2670_s11 }
0x1b0a   :  { %v1227_v12 = vpop.permute.xlu0 %1226 }
0x1b0b   :  { %v1229_v13 = vmul.f32 %v2573_v6, %v1227_v12  ;;  %v1248_v6 = vld [vmem:[%s3237_s1 + $0x50] sm:$0xff] }
0x1b0c   :  { %vm1249_vm13 = vcmp.gt.f32.partialorder %v1248_v6, 0.0 }
0x1b0d   :  { %1231 = vrot.lane.b32.xlu1 %v1229_v13, %s2671_s14 }
0x1b0e   :  { %v1237_v14 = vpop.permute.xlu0 %1236 }
0x1b0f   :  { %v2989_v15 = vsel %vm1127_vm12, %v1237_v14, %v1117_v49 }
0x1b10   :  { %1332 = vrot.lane.b32.xlu0 %v2989_v15, %s2669_s10 }
0x1b7f   :  { %v1232_v16 = vpop.permute.xlu1 %1231 }
0x1b80   :  { %v2993_v18 = vsel %vm1127_vm12, %v1232_v16, %v1112_v51  ;;  %v2995_v19 = vsel %vm1127_vm12, %v1232_v16, 0.0 }
0x1b81   :  { %1241 = vst.msk [vmem:[#allocation2 + $0x48] sm:$0xff] %vm143_vm2, %v2995_v19  ;;  %2325 = vmatmul.mubr.msk.f32.vlgmr.msra.gmra.mrb[10].mxu0 %vm34_vm3, %v2993_v18 }
0x1b82   :  { %2461 = vmatpush3.bf16.msra.mxu0 %v2458_v10  ;;  %2364 = vmatprep.mubr.msk.f32.mxu0 %vm143_vm2, %v1485_v20  ;;  %v1333_v57 = vpop.permute.xlu0 %1332 }
0x1b85   :  { %2365 = vmatmul.mubr.msk.f32.vlgmr.msra.gmra.mrb[12].mxu0 %vm143_vm2, %v1486_v21 }
0x1b86   :  { %2367 = vmatprep.mubr.msk.f32.mxu0 %vm143_vm2, %v1487_v22 }
0x1b88   :  { %v1494_v31 = vld [vmem:[#allocation2 + $0x48] sm:$0xff] }
0x1b89   :  { %2368 = vmatmul.mubr.msk.f32.gmra.mrb[14].mxu0 %vm143_vm2, %v1488_v23 }
0x1b8a   :  { %2370 = vmatprep.mubr.msk.f32.mxu0 %vm143_vm2, %v1489_v24 }
0x1b8d   :  { %2371 = vmatmul.mubr.msk.f32.gmra.mrb[16].mxu0 %vm143_vm2, %v1490_v26 }
0x1b8e   :  { %2373 = vmatprep.mubr.msk.f32.mxu0 %vm143_vm2, %v1491_v27 }
0x1b91   :  { %2374 = vmatmul.mubr.msk.f32.gmra.mrb[18].mxu0 %vm143_vm2, %v1492_v28 }
0x1b92   :  { %2376 = vmatprep.mubr.msk.f32.mxu0 %vm143_vm2, %v1493_v30 }
0x1b95   :  { %2377 = vmatmul.mubr.msk.f32.gmra.mrb[20].mxu0 %vm143_vm2, %v1494_v31  ;;  %v1511_v31 = vld [vmem:[%s3240_s4] sm:$0xff] }
0x1c54   :  { %v1319_v34 = vpop.f32.mrb[10].mxu0 }
0x1c55   :  { %v1323_v35 = vadd.f32 %v1319_v34, %v1247_v32  ;;  %v2326_v36 = vpop.f32.mrb[11].mxu0 }
0x1c57   :  { %2576 = vtanh.f32 %v1323_v35  ;;  %v2090_v49 = vmul.f32 -1.442695, %v1323_v35 }
0x1c58   :  { %v3014_v37 = vpop.f32.mrb[12].mxu0 }
0x1c59   :  { %v3016_v38 = vpop.f32.mrb[13].mxu0  ;;  %2578 = vpow2.f32 %v2090_v49 }
0x1c5c   :  { %v3018_v39 = vpop.f32.mrb[14].mxu0 }
0x1c5d   :  { %v3020_v40 = vpop.f32.mrb[15].mxu0 }
0x1c60   :  { %v3022_v41 = vpop.f32.mrb[16].mxu0 }
0x1c61   :  { %v2577_v43 = vpop.eup %2576  ;;  %v3024_v44 = vpop.f32.mrb[17].mxu0 }
0x1c62   :  { %1337 = vrot.lane.b32.xlu1 %v2577_v43, %s2669_s10 }
0x1c63   :  { %v2579_v50 = vpop.eup %2578 }
0x1c64   :  { %v3027_v45 = vpop.f32.mrb[18].mxu0  ;;  %v1327_v51 = vadd.f32 1.0, %v2579_v50 }
0x1c65   :  { %v3029_v46 = vpop.f32.mrb[19].mxu0 }
0x1c66   :  { %2580 = vrcp.f32 %v1327_v51 }
0x1c68   :  { %v3031_v47 = vpop.f32.mrb[20].mxu0 }
0x1c69   :  { %v3033_v48 = vpop.f32.mrb[21].mxu0 }
0x1c70   :  { %v2581_v54 = vpop.eup %2580 }
0x1c71   :  { %v1335_v58 = vmul.f32 %v2581_v54, %v1333_v57 }
0x1cd4   :  { %v1338_v55 = vpop.permute.xlu1 %1337 }
0x1cd5   :  { %v1340_v56 = vmul.f32 %v2581_v54, %v1338_v55 }
0x1cd7   :  { %1342 = vrot.lane.b32.xlu1 %v1340_v56, %s2669_s10 }
0x1d49   :  { %v1343_v60 = vpop.permute.xlu1 %1342 }
0x1d4a   :  { %v1345_v4 = vadd.f32 %v1343_v60, %v1335_v58 }
0x1d4c   :  { %2582 = vtanh.f32 %v1345_v4 }
0x1d56   :  { %v2583_v61 = vpop.eup %2582 }
0x1d57   :  { %1348 = vrot.lane.b32.xlu0 %v2583_v61, %s2669_s10 }
0x1d5b   :  { %1358 = vrot.lane.b32.xlu0 %v1345_v4, %s2670_s11 }
0x1dc9   :  { %v1349_v3 = vpop.permute.xlu0 %1348 }
0x1dca   :  { %v1351_v62 = vmul.f32 %v2581_v54, %v1349_v3 }
0x1dcc   :  { %1353 = vrot.lane.b32.xlu1 %v1351_v62, %s2671_s14 }
0x1dcd   :  { %v1359_v7 = vpop.permute.xlu0 %1358 }
0x1dce   :  { %v1361_v63 = vsel %vm1249_vm13, %v1359_v7, %v2989_v15 }
0x1dcf   :  { %1454 = vrot.lane.b32.xlu0 %v1361_v63, %s2669_s10 }
0x1e3e   :  { %v1354_v0 = vpop.permute.xlu1 %1353 }
0x1e3f   :  { %v1356_v1 = vsel %vm1249_vm13, %v1354_v0, %v2993_v18  ;;  %v1362_v2 = vsel %vm1249_vm13, %v1354_v0, 0.0 }
0x1e40   :  { %1363 = vst.msk [vmem:[#allocation2 + $0x50] sm:$0xff] %vm143_vm2, %v1362_v2  ;;  %2336 = vmatmul.mubr.msk.f32.vlgmr.msra.gmra.mrb[10].mxu1 %vm34_vm3, %v1356_v1  ;;  %vm1979_vm3 = vcmask 244736  }
0x1e41   :  { %v1455_v22 = vpop.permute.xlu0 %1454 }
0x1e47   :  { %v1495_v8 = vld [vmem:[#allocation2 + $0x50] sm:$0xff] }
0x1e48   :  { %2379 = vmatprep.mubr.msk.f32.mxu0 %vm143_vm2, %v1495_v8  ;;  %v2117_v8 = vld [vmem:[%s3241_s5] ss:$0 sm:$0xff]  ;;  %s2673_s5 = smov 12  }
0x1f13   :  { %v1441_v10 = vpop.f32.mrb[10].mxu1 }
0x1f14   :  { %v1445_v11 = vadd.f32 %v1441_v10, %v1369_v9  ;;  %v2337_v12 = vpop.f32.mrb[11].mxu1 }
0x1f16   :  { %2584 = vtanh.f32 %v1445_v11  ;;  %v2092_v14 = vmul.f32 -1.442695, %v1445_v11 }
0x1f18   :  { %2586 = vpow2.f32 %v2092_v14 }
0x1f20   :  { %v2585_v13 = vpop.eup %2584 }
0x1f21   :  { %1459 = vrot.lane.b32.xlu1 %v2585_v13, %s2669_s10 }
0x1f22   :  { %v2587_v15 = vpop.eup %2586 }
0x1f23   :  { %v1449_v16 = vadd.f32 1.0, %v2587_v15 }
0x1f25   :  { %2588 = vrcp.f32 %v1449_v16 }
0x1f2f   :  { %v2589_v18 = vpop.eup %2588 }
0x1f30   :  { %v1457_v23 = vmul.f32 %v2589_v18, %v1455_v22 }
0x1f93   :  { %v1460_v20 = vpop.permute.xlu1 %1459 }
0x1f94   :  { %v1462_v21 = vmul.f32 %v2589_v18, %v1460_v20 }
0x1f96   :  { %1464 = vrot.lane.b32.xlu1 %v1462_v21, %s2669_s10 }
0x2008   :  { %v1465_v24 = vpop.permute.xlu1 %1464 }
0x2009   :  { %v1467_v26 = vadd.f32 %v1465_v24, %v1457_v23 }
0x200b   :  { %2590 = vtanh.f32 %v1467_v26 }
0x2015   :  { %v2591_v27 = vpop.eup %2590 }
0x2016   :  { %1470 = vrot.lane.b32.xlu0 %v2591_v27, %s2669_s10 }
0x2088   :  { %v1471_v28 = vpop.permute.xlu0 %1470 }
0x2089   :  { %v1473_v30 = vmul.f32 %v2589_v18, %v1471_v28 }
0x208b   :  { %1475 = vrot.lane.b32.xlu1 %v1473_v30, %s2671_s14 }
0x208f   :  { %1365 = vrot.lane.b32.xlu1 %v1362_v2, %s2672_s0 }
0x2093   :  { %1121 = vrot.lane.b32.xlu1 %v2962_v52, %s2672_s0  ;;  %v1512_v52 = vld [vmem:[%s3240_s4 + $0x8] sm:$0xff] }
0x2094   :  { %v2454_v32 = vpack.c.bf16 %v1512_v52, %v1511_v31 }
0x2096   :  { %2455 = vmatprep.subr.bf16.mxu1 %v2454_v32 }
0x2097   :  { %877 = vrot.lane.b32.xlu1 %v2917_v59, %s2672_s0  ;;  %2457 = vmatpush3.bf16.msra.mxu1 %v2454_v32 }
0x209b   :  { %633 = vrot.lane.b32.xlu1 %v2871_v5, %s2672_s0  ;;  %v1370_v5 = vld [vmem:[%s3237_s1 + $0x58] sm:$0xff] }
0x209c   :  { %vm1371_vm14 = vcmp.gt.f32.partialorder %v1370_v5, 0.0 }
0x209f   :  { %389 = vrot.lane.b32.xlu1 %v2825_v17, %s2672_s0 }
0x20a3   :  { %146 = vrot.lane.b32.xlu1 %v2777_v29, %s2672_s0 }
0x20fd   :  { %v1476_v17 = vpop.permute.xlu1 %1475 }
0x20fe   :  { %v1478_v59 = vsel %vm1371_vm14, %v1476_v17, 0.0 }
0x20ff   :  { %1479 = vst.msk [vmem:[#allocation2 + $0x58] sm:$0xff] %vm143_vm2, %v1478_v59  ;;  %1481 = vrot.lane.b32.xlu0 %v1478_v59, %s2672_s0 }
0x2101   :  { %v1366_v29 = vpop.permute.xlu1 %1365 }
0x2102   :  { %1368 = vst.msk [vmem:[#allocation3 + $0x8] sm:$0xff] %vm143_vm2, %v1366_v29 }
0x2103   :  { %1243 = vrot.lane.b32.xlu0 %v2995_v19, %s2672_s0 }
0x2105   :  { %v1122_v34 = vpop.permute.xlu1 %1121 }
0x2106   :  { %1124 = vst.msk [vmem:[#allocation3 + $0x18] sm:$0xff] %vm143_vm2, %v1122_v34  ;;  %v1496_v35 = vld [vmem:[#allocation2 + $0x58] sm:$0xff] }
0x2107   :  { %999 = vrot.lane.b32.xlu0 %v2940_v25, %s2672_s0  ;;  %2380 = vmatmul.mubr.msk.f32.gmra.mrb[22].mxu0 %vm143_vm2, %v1496_v35 }
0x2109   :  { %v878_v36 = vpop.permute.xlu1 %877 }
0x210a   :  { %880 = vst.msk [vmem:[#allocation3 + $0x28] sm:$0xff] %vm143_vm2, %v878_v36 }
0x210b   :  { %755 = vrot.lane.b32.xlu0 %v2894_v33, %s2672_s0 }
0x210d   :  { %v634_v43 = vpop.permute.xlu1 %633  ;;  %v1502_v55 = vld [vmem:[#allocation3 + $0x18] sm:$0xff] }
0x210e   :  { %636 = vst.msk [vmem:[#allocation3 + $0x38] sm:$0xff] %vm143_vm2, %v634_v43 }
0x210f   :  { %511 = vrot.lane.b32.xlu0 %v2848_v42, %s2672_s0  ;;  %v1500_v42 = vld [vmem:[#allocation3 + $0x8] sm:$0xff] }
0x2111   :  { %v390_v19 = vpop.permute.xlu1 %389  ;;  %v1504_v58 = vld [vmem:[#allocation3 + $0x28] sm:$0xff] }
0x2112   :  { %392 = vst.msk [vmem:[#allocation3 + $0x48] sm:$0xff] %vm143_vm2, %v390_v19 }
0x2113   :  { %267 = vrot.lane.b32.xlu0 %v2802_v53, %s2672_s0 }
0x2115   :  { %v147_v25 = vpop.permute.xlu1 %146  ;;  %v1506_v61 = vld [vmem:[#allocation3 + $0x38] sm:$0xff] }
0x2116   :  { %149 = vst.msk [vmem:[#allocation3 + $0x58] sm:$0xff] %vm143_vm2, %v147_v25 }
0x2119   :  { %v1508_v3 = vld [vmem:[#allocation3 + $0x48] sm:$0xff] }
0x211d   :  { %v1510_v7 = vld [vmem:[#allocation3 + $0x58] sm:$0xff] }
0x2171   :  { %v1482_v49 = vpop.permute.xlu0 %1481 }
0x2172   :  { %1484 = vst.msk [vmem:[#allocation3] sm:$0xff] %vm143_vm2, %v1482_v49 }
0x2175   :  { %v1244_v50 = vpop.permute.xlu0 %1243 }
0x2176   :  { %1246 = vst.msk [vmem:[#allocation3 + $0x10] sm:$0xff] %vm143_vm2, %v1244_v50 }
0x2179   :  { %v1000_v33 = vpop.permute.xlu0 %999  ;;  %v1499_v51 = vld [vmem:[#allocation3] sm:$0xff] }
0x217a   :  { %1002 = vst.msk [vmem:[#allocation3 + $0x20] sm:$0xff] %vm143_vm2, %v1000_v33  ;;  %2342 = vmatprep.mubr.msk.f32.mxu1 %vm143_vm2, %v1499_v51 }
0x217b   :  { %2343 = vmatmul.mubr.msk.f32.vlgmr.msra.gmra.mrb[12].mxu1 %vm143_vm2, %v1500_v42 }
0x217d   :  { %v756_v54 = vpop.permute.xlu0 %755  ;;  %v1501_v53 = vld [vmem:[#allocation3 + $0x10] sm:$0xff] }
0x217e   :  { %758 = vst.msk [vmem:[#allocation3 + $0x30] sm:$0xff] %vm143_vm2, %v756_v54  ;;  %2345 = vmatprep.mubr.msk.f32.mxu1 %vm143_vm2, %v1501_v53 }
0x217f   :  { %2346 = vmatmul.mubr.msk.f32.gmra.mrb[14].mxu1 %vm143_vm2, %v1502_v55 }
0x2181   :  { %v512_v56 = vpop.permute.xlu0 %511  ;;  %v1503_v57 = vld [vmem:[#allocation3 + $0x20] sm:$0xff] }
0x2182   :  { %514 = vst.msk [vmem:[#allocation3 + $0x40] sm:$0xff] %vm143_vm2, %v512_v56  ;;  %2348 = vmatprep.mubr.msk.f32.mxu1 %vm143_vm2, %v1503_v57 }
0x2183   :  { %2349 = vmatmul.mubr.msk.f32.gmra.mrb[16].mxu1 %vm143_vm2, %v1504_v58 }
0x2185   :  { %v268_v60 = vpop.permute.xlu0 %267  ;;  %v1505_v4 = vld [vmem:[#allocation3 + $0x30] sm:$0xff] }
0x2186   :  { %270 = vst.msk [vmem:[#allocation3 + $0x50] sm:$0xff] %vm143_vm2, %v268_v60  ;;  %2351 = vmatprep.mubr.msk.f32.mxu1 %vm143_vm2, %v1505_v4 }
0x2187   :  { %2352 = vmatmul.mubr.msk.f32.gmra.mrb[18].mxu1 %vm143_vm2, %v1506_v61 }
0x2189   :  { %v1507_v6 = vld [vmem:[#allocation3 + $0x40] sm:$0xff] }
0x218a   :  { %2354 = vmatprep.mubr.msk.f32.mxu1 %vm143_vm2, %v1507_v6 }
0x218b   :  { %2355 = vmatmul.mubr.msk.f32.gmra.mrb[20].mxu1 %vm143_vm2, %v1508_v3 }
0x218d   :  { %v1509_v62 = vld [vmem:[#allocation3 + $0x50] sm:$0xff] }
0x218e   :  { %2357 = vmatprep.mubr.msk.f32.mxu1 %vm143_vm2, %v1509_v62 }
0x218f   :  { %2358 = vmatmul.mubr.msk.f32.gmra.mrb[22].mxu1 %vm143_vm2, %v1510_v7  ;;  %vm1977_vm2 = vcmask 195584  }
0x21da   :  { %v2381_v63 = vpop.f32.mrb[22].mxu0 }
0x21db   :  { %v1826_v0 = vpop.f32.mrb[23].mxu0 }
0x224e   :  { %v2344_v1 = vpop.f32.mrb[12].mxu1 }
0x224f   :  { %v1782_v2 = vadd.f32 %v3014_v37, %v2344_v1  ;;  %v1615_v9 = vpop.f32.mrb[13].mxu1 }
0x2250   :  { %v1777_v10 = vadd.f32 %v3016_v38, %v1615_v9 }
0x2251   :  { %v3117_v11 = vadd.f32 %v2117_v8, %v1782_v2 }
0x2252   :  { %v3119_v12 = vadd.f32 %v2117_v8, %v1777_v10  ;;  %v2347_v13 = vpop.f32.mrb[14].mxu1 }
0x2253   :  { %v1792_v14 = vadd.f32 %v3018_v39, %v2347_v13  ;;  %v1625_v15 = vpop.f32.mrb[15].mxu1 }
0x2254   :  { %v1787_v16 = vadd.f32 %v3020_v40, %v1625_v15  ;;  %v1854_v37 = vmax.f32 %v3119_v12, %v3117_v11 }
0x2255   :  { %v3128_v38 = vadd.f32 %v2117_v8, %v1792_v14 }
0x2256   :  { %v3125_v18 = vadd.f32 %v2117_v8, %v1787_v16  ;;  %v2350_v20 = vpop.f32.mrb[16].mxu1 }
0x2257   :  { %v1802_v21 = vadd.f32 %v3022_v41, %v2350_v20  ;;  %v1635_v22 = vpop.f32.mrb[17].mxu1 }
0x2258   :  { %v1855_v23 = vmax.f32 %v1854_v37, %v3125_v18  ;;  %v1797_v24 = vadd.f32 %v3024_v44, %v1635_v22 }
0x2259   :  { %v3136_v30 = vadd.f32 %v2117_v8, %v1802_v21 }
0x225a   :  { %v3132_v26 = vadd.f32 %v2117_v8, %v1797_v24  ;;  %v1856_v39 = vmax.f32 %v1855_v23, %v3128_v38  ;;  %v2353_v40 = vpop.f32.mrb[18].mxu1 }
0x225b   :  { %v1812_v27 = vadd.f32 %v3027_v45, %v2353_v40  ;;  %v1645_v28 = vpop.f32.mrb[19].mxu1 }
0x225c   :  { %v1857_v31 = vmax.f32 %v1856_v39, %v3132_v26  ;;  %v1807_v41 = vadd.f32 %v3029_v46, %v1645_v28 }
0x225d   :  { %v3144_v59 = vadd.f32 %v2117_v8, %v1812_v27 }
0x225e   :  { %v3140_v52 = vadd.f32 %v2117_v8, %v1807_v41  ;;  %v1858_v32 = vmax.f32 %v1857_v31, %v3136_v30  ;;  %v2356_v5 = vpop.f32.mrb[20].mxu1 }
0x225f   :  { %v1822_v44 = vadd.f32 %v3031_v47, %v2356_v5  ;;  %v1655_v17 = vpop.f32.mrb[21].mxu1 }
0x2260   :  { %v1859_v29 = vmax.f32 %v1858_v32, %v3140_v52  ;;  %v1817_v45 = vadd.f32 %v3033_v48, %v1655_v17 }
0x2261   :  { %v3151_v19 = vadd.f32 %v2117_v8, %v1822_v44 }
0x2262   :  { %v3148_v34 = vadd.f32 %v2117_v8, %v1817_v45  ;;  %v1860_v35 = vmax.f32 %v1859_v29, %v3144_v59  ;;  %v2359_v36 = vpop.f32.mrb[22].mxu1 }
0x2263   :  { %v1832_v46 = vadd.f32 %v2381_v63, %v2359_v36  ;;  %v1665_v43 = vpop.f32.mrb[23].mxu1 }
0x2264   :  { %v1861_v25 = vmax.f32 %v1860_v35, %v3148_v34  ;;  %v1827_v49 = vadd.f32 %v1826_v0, %v1665_v43 }
0x2265   :  { %v3157_v33 = vadd.f32 %v2117_v8, %v1832_v46 }
0x2266   :  { %v3154_v47 = vadd.f32 %v2117_v8, %v1827_v49  ;;  %v1862_v50 = vmax.f32 %v1861_v25, %v3151_v19 }
0x2268   :  { %v1863_v48 = vmax.f32 %v1862_v50, %v3154_v47 }
0x226a   :  { %v3161_v51 = vmax.f32 %v1863_v48, %v3157_v33 }
0x226c   :  { %v1865_v42 = vsub.f32 %v3119_v12, %v3161_v51  ;;  %v1868_v54 = vsub.f32 %v3117_v11, %v3161_v51  ;;  %v1871_v53 = vsub.f32 %v3125_v18, %v3161_v51  ;;  %v1874_v55 = vsub.f32 %v3128_v38, %v3161_v51 }
0x226d   :  { %v1886_v56 = vsub.f32 %v3144_v59, %v3161_v51  ;;  %v1889_v60 = vsub.f32 %v3148_v34, %v3161_v51  ;;  %v1877_v61 = vsub.f32 %v3132_v26, %v3161_v51  ;;  %v1892_v6 = vsub.f32 %v3151_v19, %v3161_v51 }
0x226e   :  { %v1866_v57 = vmul.f32 1.442695, %v1865_v42  ;;  %v1869_v58 = vmul.f32 1.442695, %v1868_v54  ;;  %v1872_v4 = vmul.f32 1.442695, %v1871_v53  ;;  %v1880_v3 = vsub.f32 %v3136_v30, %v3161_v51 }
0x226f   :  { %v1875_v62 = vmul.f32 1.442695, %v1874_v55  ;;  %v1895_v7 = vsub.f32 %v3154_v47, %v3161_v51  ;;  %v1898_v63 = vsub.f32 %v3157_v33, %v3161_v51  ;;  %v1878_v0 = vmul.f32 1.442695, %v1877_v61 }
0x2270   :  { %2592 = vpow2.f32 %v1866_v57  ;;  %v1883_v1 = vsub.f32 %v3140_v52, %v3161_v51  ;;  %v1881_v2 = vmul.f32 1.442695, %v1880_v3  ;;  %v1887_v9 = vmul.f32 1.442695, %v1886_v56 }
0x2271   :  { %2594 = vpow2.f32 %v1869_v58  ;;  %v1890_v14 = vmul.f32 1.442695, %v1889_v60  ;;  %v1893_v37 = vmul.f32 1.442695, %v1892_v6  ;;  %v1896_v22 = vmul.f32 1.442695, %v1895_v7 }
0x2272   :  { %2596 = vpow2.f32 %v1872_v4  ;;  %v1884_v8 = vmul.f32 1.442695, %v1883_v1  ;;  %v1899_v39 = vmul.f32 1.442695, %v1898_v63 }
0x2273   :  { %2598 = vpow2.f32 %v1875_v62 }
0x2274   :  { %2600 = vpow2.f32 %v1878_v0 }
0x2275   :  { %2602 = vpow2.f32 %v1881_v2 }
0x2276   :  { %2604 = vpow2.f32 %v1884_v8 }
0x2277   :  { %2606 = vpow2.f32 %v1887_v9 }
0x2278   :  { %2608 = vpow2.f32 %v1890_v14 }
0x2279   :  { %2610 = vpow2.f32 %v1893_v37 }
0x227a   :  { %v2593_v10 = vpop.eup %2592  ;;  %2612 = vpow2.f32 %v1896_v22 }
0x227b   :  { %v2595_v13 = vpop.eup %2594  ;;  %2614 = vpow2.f32 %v1899_v39 }
0x227c   :  { %v1901_v15 = vadd.f32 %v2595_v13, %v2593_v10  ;;  %v2597_v16 = vpop.eup %2596 }
0x227d   :  { %v2599_v21 = vpop.eup %2598 }
0x227e   :  { %v1902_v20 = vadd.f32 %v2597_v16, %v1901_v15  ;;  %v2601_v24 = vpop.eup %2600  ;;  %v2684_v15 = vmov 0  }
0x227f   :  { %v2603_v27 = vpop.eup %2602 }
0x2280   :  { %v1903_v23 = vadd.f32 %v2599_v21, %v1902_v20  ;;  %v2605_v31 = vpop.eup %2604 }
0x2281   :  { %v2607_v32 = vpop.eup %2606 }
0x2282   :  { %v1904_v40 = vadd.f32 %v2601_v24, %v1903_v23  ;;  %v2609_v44 = vpop.eup %2608 }
0x2283   :  { %v2611_v29 = vpop.eup %2610 }
0x2284   :  { %v1905_v28 = vadd.f32 %v2603_v27, %v1904_v40  ;;  %v2613_v35 = vpop.eup %2612 }
0x2285   :  { %v2615_v46 = vpop.eup %2614 }
0x2286   :  { %v1906_v41 = vadd.f32 %v2605_v31, %v1905_v28 }
0x2288   :  { %v1907_v5 = vadd.f32 %v2607_v32, %v1906_v41 }
0x228a   :  { %v1908_v17 = vadd.f32 %v2609_v44, %v1907_v5 }
0x228c   :  { %v1909_v45 = vadd.f32 %v2611_v29, %v1908_v17 }
0x228e   :  { %v1910_v36 = vadd.f32 %v2613_v35, %v1909_v45 }
0x2290   :  { %v1911_v43 = vadd.f32 %v2615_v46, %v1910_v36 }
0x2292   :  { %2616 = vlog2.f32 %v1911_v43 }
0x229c   :  { %v2617_v25 = vpop.eup %2616 }
0x229d   :  { %v1913_v49 = vmul.f32 0.6931472, %v2617_v25 }
0x229f   :  { %v1914_v50 = vadd.f32 %v1913_v49, %v3161_v51 }
0x22a1   :  { %v1917_v48 = vsub.f32 %v3125_v18, %v1914_v50  ;;  %v1916_v42 = vsub.f32 %v3117_v11, %v1914_v50  ;;  %v1923_v54 = vsub.f32 %v3148_v34, %v1914_v50  ;;  %v1922_v53 = vsub.f32 %v3144_v59, %v1914_v50 }
0x22a2   :  { %v1925_v55 = vsub.f32 %v3154_v47, %v1914_v50  ;;  %v1924_v56 = vsub.f32 %v3151_v19, %v1914_v50  ;;  %v1926_v57 = vsub.f32 %v3157_v33, %v1914_v50  ;;  %v1919_v51 = vsub.f32 %v3132_v26, %v1914_v50 }
0x22a3   :  { %1932 = vrot.lane.b32.xlu1 %v1917_v48, %s2673_s5  ;;  %1928 = vrot.lane.b32.xlu0 %v1916_v42, %s2674_s21  ;;  %v1918_v18 = vsub.f32 %v3128_v38, %v1914_v50  ;;  %v1921_v11 = vsub.f32 %v3140_v52, %v1914_v50  ;;  %v1920_v59 = vsub.f32 %v3136_v30, %v1914_v50 }
0x22a4   :  { %v1915_v38 = vsub.f32 %v3119_v12, %v1914_v50 }
0x22a7   :  { %1940 = vrot.lane.b32.xlu1 %v1919_v51, %s2675_s22  ;;  %1936 = vrot.lane.b32.xlu0 %v1918_v18, %s2676_s23 }
0x22ab   :  { %1948 = vrot.lane.b32.xlu1 %v1921_v11, %s2677_s24  ;;  %1944 = vrot.lane.b32.xlu0 %v1920_v59, %s2678_s25 }
0x22af   :  { %1956 = vrot.lane.b32.xlu1 %v1923_v54, %s2679_s26  ;;  %1952 = vrot.lane.b32.xlu0 %v1922_v53, %s2680_s27 }
0x22b3   :  { %1964 = vrot.lane.b32.xlu1 %v1925_v55, %s2681_s28  ;;  %1960 = vrot.lane.b32.xlu0 %v1924_v56, %s2682_s29 }
0x22b7   :  { %1968 = vrot.lane.b32.xlu0 %v1926_v57, %s2683_s30 }
0x2315   :  { %v1933_v26 = vpop.permute.xlu1 %1932  ;;  %v1929_v52 = vpop.permute.xlu0 %1928 }
0x2316   :  { %v1972_v30 = vsel %vm1971_vm15, %v1915_v38, %v1929_v52 }
0x2317   :  { %v1974_v47 = vsel %vm1973_vm0, %v1972_v30, %v1933_v26 }
0x2319   :  { %v1941_v34 = vpop.permute.xlu1 %1940  ;;  %v1937_v19 = vpop.permute.xlu0 %1936 }
0x231a   :  { %v1976_v33 = vsel %vm1975_vm1, %v1974_v47, %v1937_v19 }
0x231b   :  { %v1978_v4 = vsel %vm1977_vm2, %v1976_v33, %v1941_v34 }
0x231d   :  { %v1949_v58 = vpop.permute.xlu1 %1948  ;;  %v1945_v60 = vpop.permute.xlu0 %1944 }
0x231e   :  { %v1980_v61 = vsel %vm1979_vm3, %v1978_v4, %v1945_v60 }
0x231f   :  { %v1982_v3 = vsel %vm1981_vm4, %v1980_v61, %v1949_v58 }
0x2321   :  { %v1957_v6 = vpop.permute.xlu1 %1956  ;;  %v1953_v12 = vpop.permute.xlu0 %1952 }
0x2322   :  { %v1984_v62 = vsel %vm1983_vm5, %v1982_v3, %v1953_v12 }
0x2323   :  { %v1986_v63 = vsel %vm1985_vm6, %v1984_v62, %v1957_v6 }
0x2325   :  { %v1961_v7 = vpop.permute.xlu0 %1960  ;;  %v1965_v0 = vpop.permute.xlu1 %1964 }
0x2326   :  { %v1988_v1 = vsel %vm1987_vm7, %v1986_v63, %v1961_v7 }
0x2327   :  { %v1990_v8 = vsel %vm1989_vm8, %v1988_v1, %v1965_v0 }
0x2329   :  { %v1969_v2 = vpop.permute.xlu0 %1968 }
0x232a   :  { %v1992_v9 = vsel %vm1991_vm9, %v1990_v8, %v1969_v2 }
0x232b   :  { %v1994_v10 = vsel %vm1993_vm10, %v1992_v9, 0.0 }
0x232c   :  { %1995 = vst [vmem:[#allocation4] sm:$0xff] %v1994_v10  ;;  %1997 = vrot.lane.b32.xlu1 %v1994_v10, %s2673_s5 }
0x239e   :  { %v1998_v13 = vpop.permute.xlu1 %1997 }
0x239f   :  { %vm2000_vm11 = vcmp.gt.f32.partialorder %v1994_v10, %v1998_v13 }
0x23a0   :  { %v2002_v14 = vsel %vm2000_vm11, %v1994_v10, %v1998_v13  ;;  %v2001_v16 = vsel %vm2000_vm11, 1, %v2684_v15 }
0x23a1   :  { %2004 = vrot.lane.b32.xlu0 %v2002_v14, %s2673_s5  ;;  %2008 = vrot.lane.b32.xlu1 %v2001_v16, %s2673_s5 }
0x2413   :  { %v2005_v37 = vpop.permute.xlu0 %2004  ;;  %v2009_v20 = vpop.permute.xlu1 %2008 }
0x2414   :  { %vm2007_vm12 = vcmp.gt.f32.partialorder %v1994_v10, %v2005_v37 }
0x2415   :  { %v2010_v21 = vsel %vm2007_vm12, 2, %v2009_v20  ;;  %v2011_v22 = vsel %vm2007_vm12, %v1994_v10, %v2005_v37 }
0x2416   :  { %2013 = vrot.lane.b32.xlu0 %v2011_v22, %s2673_s5  ;;  %2017 = vrot.lane.b32.xlu1 %v2010_v21, %s2673_s5 }
0x2488   :  { %v2014_v23 = vpop.permute.xlu0 %2013  ;;  %v2018_v24 = vpop.permute.xlu1 %2017 }
0x2489   :  { %vm2016_vm13 = vcmp.gt.f32.partialorder %v1994_v10, %v2014_v23 }
0x248a   :  { %v2019_v39 = vsel %vm2016_vm13, 3, %v2018_v24  ;;  %v2020_v40 = vsel %vm2016_vm13, %v1994_v10, %v2014_v23 }
0x248b   :  { %2022 = vrot.lane.b32.xlu0 %v2020_v40, %s2673_s5  ;;  %2026 = vrot.lane.b32.xlu1 %v2019_v39, %s2673_s5 }
0x24fd   :  { %v2023_v27 = vpop.permute.xlu0 %2022  ;;  %v2027_v28 = vpop.permute.xlu1 %2026 }
0x24fe   :  { %vm2025_vm14 = vcmp.gt.f32.partialorder %v1994_v10, %v2023_v27 }
0x24ff   :  { %v2028_v31 = vsel %vm2025_vm14, 4, %v2027_v28  ;;  %v2029_v41 = vsel %vm2025_vm14, %v1994_v10, %v2023_v27 }
0x2500   :  { %2031 = vrot.lane.b32.xlu0 %v2029_v41, %s2673_s5  ;;  %2035 = vrot.lane.b32.xlu1 %v2028_v31, %s2673_s5 }
0x2501   :  { %2629 = shalt.err (!%p2626_p4)
}
0x2502   :  { %s2630_s13 = scalar_lea.hbm %s3242_s6, 128 }
0x2503   :  { %p2631_p5 = scmp.ne.s32.totalorder %s3242_s6, %s2630_s13  ;;  %p2634_p6 = scmp.lt.u32.totalorder %s2630_s13, %s3242_s6 }
0x2505   :  { %p2636_p7 = pnand %p2634_p6, %p2631_p5 }
0x2507   :  { %2639 = shalt.err (!%p2636_p7)
}
0x2508   :  { %2051 = dma.vmem_to_hbm [thread:$0]  %s2049_s2, 128, %s3242_s6, [#allocation5]  }
0x2509   :  { %s2686_s17 = smov 68   ;;  %s2687_s18 = smov [#allocation6]  }
0x250a   :  { %s2058_s19 = sshll.u32 %s2687_s18, 4  ;;  %s2059_s19 = int_to_ptr.vmem [resolvable:$true] %s2058_s19 }
0x250b   :  { %s2640_s20 = scalar_lea.vmem %s2059_s19, 128  ;;  %p2645_p9 = scmp.lt.s32.totalorder %s2059_s19, %s2059_s19 }
0x250c   :  { %p2641_p8 = scmp.ne.s32.totalorder %s2059_s19, %s2640_s20  ;;  %p2646_p10 = scmp.lt.s32.totalorder %s2640_s20, %s2640_s20 }
0x250e   :  { %p2647_p11 = por %p2646_p10, %p2645_p9 }
0x2510   :  { %p2648_p12 = pnand %p2647_p11, %p2641_p8 }
0x2572   :  { %v2032_v32 = vpop.permute.xlu0 %2031  ;;  %v2036_v5 = vpop.permute.xlu1 %2035 }
0x2573   :  { %vm2034_vm15 = vcmp.gt.f32.partialorder %v1994_v10, %v2032_v32 }
0x2574   :  { %v2037_v44 = vsel %vm2034_vm15, 5, %v2036_v5 }
0x2575   :  { %2038 = vrot.lane.b32.xlu0 %v2037_v44, %s2686_s17 }
0x25e7   :  { %v2039_v17 = vpop.permute.xlu0 %2038 }
0x25e8   :  { %v2040_v29 = vsel %vm1973_vm0, %v2039_v17, 0 }
0x25e9   :  { %2041 = vst [vmem:[#allocation6] sm:$0xff] %v2040_v29 }
0x25ea   :  { %2651 = shalt.err (!%p2648_p12)
}
0x25eb   :  { %s2652_s4 = scalar_lea.hbm %s3243_s7, 128 }
0x25ec   :  { %p2653_p13 = scmp.ne.s32.totalorder %s3243_s7, %s2652_s4  ;;  %p2656_p0 = scmp.lt.u32.totalorder %s2652_s4, %s3243_s7 }
0x25ee   :  { %p2658_p1 = pnand %p2656_p0, %p2653_p13 }
0x25f0   :  { %2661 = shalt.err (!%p2658_p1)
}
0x25f1   :  { %2061 = dma.vmem_to_hbm [thread:$0]  %s2059_s19, 128, %s3243_s7, [#allocation7]  }
0x25f2   :  { %2662 = dma.done.wait [#allocation5], 128  }
0x25f3   :  { %2663 = vsyncadd [#allocation5], 4294967168 }
0x25f4   :  { %2664 = dma.done.wait [#allocation7], 128  }
0x25f5   :  { %2665 = vsyncadd [#allocation7], 4294967168 }
0x25f6   :  { %2068 = vsyncpa [#allocation5], 1 }
0x25f7   :  { %2069 = vsyncpa [#allocation7], 1 }

</bundles_post_ra>
